<compile_context>
chip_gen: v7x
topology: tpu7x:2x2x1
jax: 0.10.0
libtpu: 0.0.40
codegen_flags: <defaults>
</compile_context>

<pallas_src>
import math
from functools import partial

import jax
import jax.numpy as jnp
from jax.experimental import pallas as pl
from jax.experimental.pallas import tpu as pltpu

# Module defaults from the PyTorch spec.
D_MODEL = 128
NHEAD = 8
HEAD_DIM = D_MODEL // NHEAD          # 16
DIM_FF = 512
EPS_LN = 1e-5                        # nn.LayerNorm default eps (elementwise_affine=False)


def _layernorm(x, eps=EPS_LN):
    mu = jnp.mean(x, axis=-1, keepdims=True)
    var = jnp.mean((x - mu) ** 2, axis=-1, keepdims=True)
    return (x - mu) * jax.lax.rsqrt(var + eps)


def _make_kernel(block_batch, seq):
    BB, S, D, H, HD = block_batch, seq, D_MODEL, NHEAD, HEAD_DIM
    bf16, f32 = jnp.bfloat16, jnp.float32

    def kernel(x_ref, wqkv_ref, bqkv_ref, wo_ref, bo_ref,
               w1_ref, b1_ref, w2_ref, b2_ref, o_ref):
        x = x_ref[...]                                                    # (BB*S, D) f32

        # ---- norm1 (LayerNorm, no affine) ----
        xn = _layernorm(x)

        # ---- fused QKV projection (pre-transposed bf16 weights; Q-scale folded in) ----
        qkv = jnp.dot(xn.astype(bf16), wqkv_ref[...],
                      preferred_element_type=f32) + bqkv_ref[...]         # (BB*S, 3D)

        # ---- attention: statically-unrolled per-head loop (no concat split/merge) ----
        # Per head: lane-slice q/k/v straight from qkv, build K^T once (contraction dim
        # on sublanes), batched-over-BB matmuls, and fold the head merge into the
        # out-projection by accumulating a_h @ W_o[h*HD:(h+1)*HD, :] into a lane-dense
        # (BB*S, D) f32 accumulator.
        attn_acc = None
        for h in range(H):
            qh = qkv[:, h * HD:(h + 1) * HD].reshape(BB, S, HD).astype(bf16)
            kh = qkv[:, D + h * HD:D + (h + 1) * HD].reshape(BB, S, HD)
            vh = qkv[:, 2 * D + h * HD:2 * D + (h + 1) * HD].reshape(BB, S, HD).astype(bf16)

            khT = jnp.swapaxes(kh, 1, 2).astype(bf16)                     # (BB, HD, S)
            s = jnp.einsum('bqd,bdk->bqk', qh, khT,
                           preferred_element_type=f32)                    # (BB, S, S)
            s = s - jnp.max(s, axis=-1, keepdims=True)
            p = jnp.exp(s)
            p = p * pl.reciprocal(jnp.sum(p, axis=-1, keepdims=True), approx=True)
            ah = jnp.einsum('bqk,bkd->bqd', p.astype(bf16), vh,
                            preferred_element_type=f32)                   # (BB, S, HD)

            contrib = jnp.dot(ah.reshape(BB * S, HD).astype(bf16),
                              wo_ref[h * HD:(h + 1) * HD, :],
                              preferred_element_type=f32)                 # (BB*S, D)
            attn_acc = contrib if attn_acc is None else attn_acc + contrib
        attn = attn_acc + bo_ref[...]

        # ---- residual 1 (dropout == identity in eval) ----
        x1 = x + attn

        # ---- norm2 + MLP (fc1 -> ReLU -> fc2) ----
        xn2 = _layernorm(x1)
        h1 = jnp.dot(xn2.astype(bf16), w1_ref[...],
                     preferred_element_type=f32) + b1_ref[...]            # (BB*S, FF)
        h1 = jnp.maximum(h1, 0.0)
        y = jnp.dot(h1.astype(bf16), w2_ref[...],
                    preferred_element_type=f32) + b2_ref[...]             # (BB*S, D)

        # ---- residual 2 ----
        o_ref[...] = (x1 + y).astype(o_ref.dtype)

    return kernel


@partial(jax.jit, static_argnames=("block_batch",))
def transformer_encoder_layer(src, proc_params, block_batch=None):
    """src: (B, S, D) batch-first. Eval-mode forward of the PyTorch layer."""
    B, S, D = src.shape
    if block_batch is None:
        # Largest batch block (divisor of B) keeping <= 512 rows per grid step:
        # biggest tile that comfortably fits VMEM and keeps matmuls pipelined.
        block_batch = 1
        for bb in range(1, B + 1):
            if B % bb == 0 and bb * S <= 512:
                block_batch = bb
    BB = block_batch
    assert B % BB == 0, "block_batch must divide the batch size"
    rows = BB * S
    grid = (B // BB,)

    x2d = src.reshape(B * S, D)       # lane-dense activations (last dim = 128)
    FF = proc_params[4].shape[1]

    # Streaming spec for activations; constant-index specs keep weights VMEM-resident.
    x_spec = pl.BlockSpec((rows, D), lambda i: (i, 0))

    def resident(arr):
        return pl.BlockSpec(arr.shape, lambda i: (0, 0))

    flops = 2 * B * S * (3 * D * D + D * D + 2 * D * FF) + 4 * B * S * S * D
    transcendentals = B * NHEAD * S * S + B * NHEAD * S + 2 * B * S
    bytes_accessed = (2 * x2d.size * x2d.dtype.itemsize
                      + sum(int(p.size) * p.dtype.itemsize for p in proc_params))

    out = pl.pallas_call(
        _make_kernel(BB, S),
        out_shape=jax.ShapeDtypeStruct((B * S, D), src.dtype),
        grid=grid,
        in_specs=[x_spec] + [resident(p) for p in proc_params],
        out_specs=pl.BlockSpec((rows, D), lambda i: (i, 0)),
        input_output_aliases={0: 0},
        compiler_params=pltpu.CompilerParams(
            dimension_semantics=("parallel",),
            vmem_limit_bytes=32 * 1024 * 1024),
        cost_estimate=pl.CostEstimate(flops=flops,
                                      transcendentals=transcendentals,
                                      bytes_accessed=bytes_accessed),
    )(x2d, *proc_params)
    return out.reshape(B, S, D)


def init_params(key):
    """Raw parameters in PyTorch layout (Linear weight = (out, in))."""
    ks = jax.random.split(key, 8)
    d, f = D_MODEL, DIM_FF
    wqkv = jax.random.normal(ks[0], (3 * d, d), jnp.float32) / math.sqrt(d)
    bqkv = jax.random.normal(ks[1], (3 * d,), jnp.float32) * 0.02
    wo = jax.random.normal(ks[2], (d, d), jnp.float32) / math.sqrt(d)
    bo = jax.random.normal(ks[3], (d,), jnp.float32) * 0.02
    w1 = jax.random.normal(ks[4], (f, d), jnp.float32) / math.sqrt(d)
    b1 = jax.random.normal(ks[5], (f,), jnp.float32) * 0.02
    w2 = jax.random.normal(ks[6], (d, f), jnp.float32) / math.sqrt(f)
    b2 = jax.random.normal(ks[7], (d,), jnp.float32) * 0.02
    return wqkv, bqkv, wo, bo, w1, b1, w2, b2


def preprocess_params(params):
    """One-time static prep: fold 1/sqrt(head_dim) into the Q rows of in_proj,
    pre-transpose every weight (no in-kernel .T), cast matmul weights to bf16;
    biases stay f32 (added to f32 accumulators)."""
    wqkv, bqkv, wo, bo, w1, b1, w2, b2 = params
    scale = 1.0 / math.sqrt(HEAD_DIM)
    wqkv = wqkv.at[:D_MODEL].multiply(scale)
    bqkv = bqkv.at[:D_MODEL].multiply(scale)
    bf16 = jnp.bfloat16
    return (wqkv.T.astype(bf16), bqkv.reshape(1, -1).astype(jnp.float32),
            wo.T.astype(bf16),   bo.reshape(1, -1).astype(jnp.float32),
            w1.T.astype(bf16),   b1.reshape(1, -1).astype(jnp.float32),
            w2.T.astype(bf16),   b2.reshape(1, -1).astype(jnp.float32))


def reference(src, proc_params):
    """Pure-JAX reference of the PyTorch eval-mode forward, using the same
    pre-processed weights and the same bf16-operand / f32-accumulation policy."""
    wqkv_t, bqkv, wo_t, bo, w1_t, b1, w2_t, b2 = proc_params
    B, S, D = src.shape
    H, HD = NHEAD, HEAD_DIM
    f32, bf16 = jnp.float32, jnp.bfloat16

    x = src.reshape(B * S, D)
    xn = _layernorm(x)
    qkv = jnp.dot(xn.astype(bf16), wqkv_t, preferred_element_type=f32) + bqkv
    q = qkv[:, :D].astype(bf16).reshape(B, S, H, HD)
    k = qkv[:, D:2 * D].astype(bf16).reshape(B, S, H, HD)
    v = qkv[:, 2 * D:].astype(bf16).reshape(B, S, H, HD)
    s = jnp.einsum('bqhd,bkhd->bhqk', q, k, preferred_element_type=f32)
    p = jax.nn.softmax(s, axis=-1)
    a = jnp.einsum('bhqk,bkhd->bqhd', p.astype(bf16), v,
                   preferred_element_type=f32).reshape(B * S, D)
    attn = jnp.dot(a.astype(bf16), wo_t, preferred_element_type=f32) + bo
    x1 = x + attn
    xn2 = _layernorm(x1)
    h1 = jnp.maximum(
        jnp.dot(xn2.astype(bf16), w1_t, preferred_element_type=f32) + b1, 0.0)
    y = jnp.dot(h1.astype(bf16), w2_t, preferred_element_type=f32) + b2
    return (x1 + y).reshape(B, S, D)


if __name__ == "__main__":
    key = jax.random.PRNGKey(0)
    k_x, k_p, k_x2 = jax.random.split(key, 3)
    proc = preprocess_params(init_params(k_p))

    # Small shape consistent with the module defaults.
    B, S = 2, 8
    src = jax.random.normal(k_x, (B, S, D_MODEL), jnp.float32)
    out = jax.block_until_ready(transformer_encoder_layer(src, proc))
    ref = jax.block_until_ready(reference(src, proc))
    assert out.shape == (B, S, D_MODEL)
    assert bool(jnp.all(jnp.isfinite(out)))
    # kernel and reference share bf16 operand rounding + f32 accumulation; the only
    # deliberate divergence is the EUP approximate reciprocal in the softmax.
    max_err = float(jnp.max(jnp.abs(out - ref)))
    assert max_err < 2e-2, f"mismatch vs reference: max abs err = {max_err}"

    # Second run exercising a multi-step "parallel" batch grid with resident weights
    # and input/output aliasing across grid steps.
    B2, S2 = 6, 8
    src2 = jax.random.normal(k_x2, (B2, S2, D_MODEL), jnp.float32)
    out2 = jax.block_until_ready(transformer_encoder_layer(src2, proc, block_batch=2))
    ref2 = jax.block_until_ready(reference(src2, proc))
    max_err2 = float(jnp.max(jnp.abs(out2 - ref2)))
    assert out2.shape == (B2, S2, D_MODEL)
    assert max_err2 < 2e-2, f"mismatch vs reference (gridded): max abs err = {max_err2}"

    print("KERNEL_OK")
</pallas_src>

<mosaic_0001>
module attributes {stable_mosaic.version = 11 : i64} {
  func.func @kernel(%arg0: i32, %arg1: memref<16x128xf32, #tpu.memory_space<vmem>>, %arg2: memref<128x384xbf16, #tpu.memory_space<vmem>>, %arg3: memref<1x384xf32, #tpu.memory_space<vmem>>, %arg4: memref<128x128xbf16, #tpu.memory_space<vmem>>, %arg5: memref<1x128xf32, #tpu.memory_space<vmem>>, %arg6: memref<128x512xbf16, #tpu.memory_space<vmem>>, %arg7: memref<1x512xf32, #tpu.memory_space<vmem>>, %arg8: memref<512x128xbf16, #tpu.memory_space<vmem>>, %arg9: memref<1x128xf32, #tpu.memory_space<vmem>>, %arg10: memref<16x128xf32, #tpu.memory_space<vmem>>) attributes {dimension_semantics = [#tpu.dimension_semantics<parallel>], iteration_bounds = array<i64: 1>, scalar_prefetch = 0 : i64, scratch_operands = 0 : i64, tpu.core_type = #tpu.core_type<tc>, window_params = [{transform_indices = @transform_0, window_bounds = array<i64: 16, 128>}, {pipeline_mode = #tpu.pipeline_mode<synchronous>, transform_indices = @transform_1, window_bounds = array<i64: 128, 384>}, {pipeline_mode = #tpu.pipeline_mode<synchronous>, transform_indices = @transform_2, window_bounds = array<i64: 1, 384>}, {pipeline_mode = #tpu.pipeline_mode<synchronous>, transform_indices = @transform_3, window_bounds = array<i64: 128, 128>}, {pipeline_mode = #tpu.pipeline_mode<synchronous>, transform_indices = @transform_4, window_bounds = array<i64: 1, 128>}, {pipeline_mode = #tpu.pipeline_mode<synchronous>, transform_indices = @transform_5, window_bounds = array<i64: 128, 512>}, {pipeline_mode = #tpu.pipeline_mode<synchronous>, transform_indices = @transform_6, window_bounds = array<i64: 1, 512>}, {pipeline_mode = #tpu.pipeline_mode<synchronous>, transform_indices = @transform_7, window_bounds = array<i64: 512, 128>}, {pipeline_mode = #tpu.pipeline_mode<synchronous>, transform_indices = @transform_8, window_bounds = array<i64: 1, 128>}, {transform_indices = @transform_9, window_bounds = array<i64: 16, 128>}]} {
    %c0 = arith.constant 0 : index
    %c0_0 = arith.constant 0 : index
    %0 = vector.load %arg1[%c0, %c0_0] : memref<16x128xf32, #tpu.memory_space<vmem>>, vector<16x128xf32>
    %cst = arith.constant dense<0.000000e+00> : vector<16xf32>
    %1 = vector.multi_reduction <add>, %0, %cst [1] : vector<16x128xf32> to vector<16xf32>
    %2 = vector.shape_cast %1 : vector<16xf32> to vector<16x1xf32>
    %cst_1 = arith.constant 1.280000e+02 : f32
    %3 = vector.broadcast %cst_1 : f32 to vector<16x1xf32>
    %4 = arith.divf %2, %3 : vector<16x1xf32>
    %5 = vector.broadcast %4 : vector<16x1xf32> to vector<16x128xf32>
    %6 = arith.subf %0, %5 : vector<16x128xf32>
    %7 = arith.mulf %6, %6 : vector<16x128xf32>
    %cst_2 = arith.constant dense<0.000000e+00> : vector<16xf32>
    %8 = vector.multi_reduction <add>, %7, %cst_2 [1] : vector<16x128xf32> to vector<16xf32>
    %9 = vector.shape_cast %8 : vector<16xf32> to vector<16x1xf32>
    %cst_3 = arith.constant 1.280000e+02 : f32
    %10 = vector.broadcast %cst_3 : f32 to vector<16x1xf32>
    %11 = arith.divf %9, %10 : vector<16x1xf32>
    %12 = vector.broadcast %4 : vector<16x1xf32> to vector<16x128xf32>
    %13 = arith.subf %0, %12 : vector<16x128xf32>
    %cst_4 = arith.constant 9.99999974E-6 : f32
    %14 = vector.broadcast %cst_4 : f32 to vector<16x1xf32>
    %15 = arith.addf %11, %14 : vector<16x1xf32>
    %16 = math.rsqrt %15 : vector<16x1xf32>
    %17 = vector.broadcast %16 : vector<16x1xf32> to vector<16x128xf32>
    %18 = arith.mulf %13, %17 : vector<16x128xf32>
    %19 = arith.truncf %18 : vector<16x128xf32> to vector<16x128xbf16>
    %c0_5 = arith.constant 0 : index
    %c0_6 = arith.constant 0 : index
    %20 = vector.load %arg2[%c0_5, %c0_6] : memref<128x384xbf16, #tpu.memory_space<vmem>>, vector<128x384xbf16>
    %cst_7 = arith.constant dense<0.000000e+00> : vector<16x384xf32>
    %21 = tpu.matmul %19, %20, %cst_7 {dimension_numbers = #tpu.dot_dimension_numbers<[1], [0], [0], [1], [0, 0, 1, 1], [], []>} : vector<16x128xbf16>, vector<128x384xbf16>, vector<16x384xf32> -> vector<16x384xf32>
    %c0_8 = arith.constant 0 : index
    %c0_9 = arith.constant 0 : index
    %22 = vector.load %arg3[%c0_8, %c0_9] : memref<1x384xf32, #tpu.memory_space<vmem>>, vector<1x384xf32>
    %23 = vector.broadcast %22 : vector<1x384xf32> to vector<16x384xf32>
    %24 = arith.addf %21, %23 : vector<16x384xf32>
    %25 = vector.extract_strided_slice %24 {offsets = [0, 0], sizes = [16, 16], strides = [1, 1]} : vector<16x384xf32> to vector<16x16xf32>
    %26 = vector.shape_cast %25 : vector<16x16xf32> to vector<2x8x16xf32>
    %27 = arith.truncf %26 : vector<2x8x16xf32> to vector<2x8x16xbf16>
    %28 = vector.extract_strided_slice %24 {offsets = [0, 128], sizes = [16, 16], strides = [1, 1]} : vector<16x384xf32> to vector<16x16xf32>
    %29 = vector.shape_cast %28 : vector<16x16xf32> to vector<2x8x16xf32>
    %30 = vector.extract_strided_slice %24 {offsets = [0, 256], sizes = [16, 16], strides = [1, 1]} : vector<16x384xf32> to vector<16x16xf32>
    %31 = vector.shape_cast %30 : vector<16x16xf32> to vector<2x8x16xf32>
    %32 = arith.truncf %31 : vector<2x8x16xf32> to vector<2x8x16xbf16>
    %33 = tpu.transpose %29, [0, 2, 1] : vector<2x8x16xf32> -> vector<2x16x8xf32>
    %34 = arith.truncf %33 : vector<2x16x8xf32> to vector<2x16x8xbf16>
    "tpu.trace_start"() <{level = 10 : i32, message = "bqd,bdk->bqk"}> : () -> ()
    %cst_10 = arith.constant dense<0.000000e+00> : vector<2x8x8xf32>
    %35 = tpu.matmul %27, %34, %cst_10 {dimension_numbers = #tpu.dot_dimension_numbers<[2], [1], [1], [2], [0, 0, 0, 1, 1, 2], [0], [0]>} : vector<2x8x16xbf16>, vector<2x16x8xbf16>, vector<2x8x8xf32> -> vector<2x8x8xf32>
    "tpu.trace_stop"() : () -> ()
    %cst_11 = arith.constant dense<0xFF800000> : vector<2x8xf32>
    %36 = vector.multi_reduction <maximumf>, %35, %cst_11 [2] : vector<2x8x8xf32> to vector<2x8xf32>
    %37 = vector.shape_cast %36 : vector<2x8xf32> to vector<2x8x1xf32>
    %38 = vector.broadcast %37 : vector<2x8x1xf32> to vector<2x8x8xf32>
    %39 = arith.subf %35, %38 : vector<2x8x8xf32>
    %40 = math.exp %39 : vector<2x8x8xf32>
    %cst_12 = arith.constant dense<0.000000e+00> : vector<2x8xf32>
    %41 = vector.multi_reduction <add>, %40, %cst_12 [2] : vector<2x8x8xf32> to vector<2x8xf32>
    %42 = vector.shape_cast %41 : vector<2x8xf32> to vector<2x8x1xf32>
    %43 = tpu.reciprocal %42 {approx = true} : vector<2x8x1xf32> -> vector<2x8x1xf32>
    %44 = vector.broadcast %43 : vector<2x8x1xf32> to vector<2x8x8xf32>
    %45 = arith.mulf %40, %44 : vector<2x8x8xf32>
    %46 = arith.truncf %45 : vector<2x8x8xf32> to vector<2x8x8xbf16>
    "tpu.trace_start"() <{level = 10 : i32, message = "bqk,bkd->bqd"}> : () -> ()
    %cst_13 = arith.constant dense<0.000000e+00> : vector<2x8x16xf32>
    %47 = tpu.matmul %46, %32, %cst_13 {dimension_numbers = #tpu.dot_dimension_numbers<[2], [1], [1], [2], [0, 0, 0, 1, 1, 2], [0], [0]>} : vector<2x8x8xbf16>, vector<2x8x16xbf16>, vector<2x8x16xf32> -> vector<2x8x16xf32>
    "tpu.trace_stop"() : () -> ()
    %48 = vector.shape_cast %47 : vector<2x8x16xf32> to vector<16x16xf32>
    %49 = arith.truncf %48 : vector<16x16xf32> to vector<16x16xbf16>
    %c0_14 = arith.constant 0 : index
    %c0_15 = arith.constant 0 : index
    %50 = vector.load %arg4[%c0_14, %c0_15] : memref<128x128xbf16, #tpu.memory_space<vmem>>, vector<16x128xbf16>
    %cst_16 = arith.constant dense<0.000000e+00> : vector<16x128xf32>
    %51 = tpu.matmul %49, %50, %cst_16 {dimension_numbers = #tpu.dot_dimension_numbers<[1], [0], [0], [1], [0, 0, 1, 1], [], []>} : vector<16x16xbf16>, vector<16x128xbf16>, vector<16x128xf32> -> vector<16x128xf32>
    %52 = vector.extract_strided_slice %24 {offsets = [0, 16], sizes = [16, 16], strides = [1, 1]} : vector<16x384xf32> to vector<16x16xf32>
    %53 = vector.shape_cast %52 : vector<16x16xf32> to vector<2x8x16xf32>
    %54 = arith.truncf %53 : vector<2x8x16xf32> to vector<2x8x16xbf16>
    %55 = vector.extract_strided_slice %24 {offsets = [0, 144], sizes = [16, 16], strides = [1, 1]} : vector<16x384xf32> to vector<16x16xf32>
    %56 = vector.shape_cast %55 : vector<16x16xf32> to vector<2x8x16xf32>
    %57 = vector.extract_strided_slice %24 {offsets = [0, 272], sizes = [16, 16], strides = [1, 1]} : vector<16x384xf32> to vector<16x16xf32>
    %58 = vector.shape_cast %57 : vector<16x16xf32> to vector<2x8x16xf32>
    %59 = arith.truncf %58 : vector<2x8x16xf32> to vector<2x8x16xbf16>
    %60 = tpu.transpose %56, [0, 2, 1] : vector<2x8x16xf32> -> vector<2x16x8xf32>
    %61 = arith.truncf %60 : vector<2x16x8xf32> to vector<2x16x8xbf16>
    "tpu.trace_start"() <{level = 10 : i32, message = "bqd,bdk->bqk"}> : () -> ()
    %cst_17 = arith.constant dense<0.000000e+00> : vector<2x8x8xf32>
    %62 = tpu.matmul %54, %61, %cst_17 {dimension_numbers = #tpu.dot_dimension_numbers<[2], [1], [1], [2], [0, 0, 0, 1, 1, 2], [0], [0]>} : vector<2x8x16xbf16>, vector<2x16x8xbf16>, vector<2x8x8xf32> -> vector<2x8x8xf32>
    "tpu.trace_stop"() : () -> ()
    %cst_18 = arith.constant dense<0xFF800000> : vector<2x8xf32>
    %63 = vector.multi_reduction <maximumf>, %62, %cst_18 [2] : vector<2x8x8xf32> to vector<2x8xf32>
    %64 = vector.shape_cast %63 : vector<2x8xf32> to vector<2x8x1xf32>
    %65 = vector.broadcast %64 : vector<2x8x1xf32> to vector<2x8x8xf32>
    %66 = arith.subf %62, %65 : vector<2x8x8xf32>
    %67 = math.exp %66 : vector<2x8x8xf32>
    %cst_19 = arith.constant dense<0.000000e+00> : vector<2x8xf32>
    %68 = vector.multi_reduction <add>, %67, %cst_19 [2] : vector<2x8x8xf32> to vector<2x8xf32>
    %69 = vector.shape_cast %68 : vector<2x8xf32> to vector<2x8x1xf32>
    %70 = tpu.reciprocal %69 {approx = true} : vector<2x8x1xf32> -> vector<2x8x1xf32>
    %71 = vector.broadcast %70 : vector<2x8x1xf32> to vector<2x8x8xf32>
    %72 = arith.mulf %67, %71 : vector<2x8x8xf32>
    %73 = arith.truncf %72 : vector<2x8x8xf32> to vector<2x8x8xbf16>
    "tpu.trace_start"() <{level = 10 : i32, message = "bqk,bkd->bqd"}> : () -> ()
    %cst_20 = arith.constant dense<0.000000e+00> : vector<2x8x16xf32>
    %74 = tpu.matmul %73, %59, %cst_20 {dimension_numbers = #tpu.dot_dimension_numbers<[2], [1], [1], [2], [0, 0, 0, 1, 1, 2], [0], [0]>} : vector<2x8x8xbf16>, vector<2x8x16xbf16>, vector<2x8x16xf32> -> vector<2x8x16xf32>
    "tpu.trace_stop"() : () -> ()
    %75 = vector.shape_cast %74 : vector<2x8x16xf32> to vector<16x16xf32>
    %76 = arith.truncf %75 : vector<16x16xf32> to vector<16x16xbf16>
    %c16 = arith.constant 16 : index
    %c0_21 = arith.constant 0 : index
    %77 = vector.load %arg4[%c16, %c0_21] : memref<128x128xbf16, #tpu.memory_space<vmem>>, vector<16x128xbf16>
    %cst_22 = arith.constant dense<0.000000e+00> : vector<16x128xf32>
    %78 = tpu.matmul %76, %77, %cst_22 {dimension_numbers = #tpu.dot_dimension_numbers<[1], [0], [0], [1], [0, 0, 1, 1], [], []>} : vector<16x16xbf16>, vector<16x128xbf16>, vector<16x128xf32> -> vector<16x128xf32>
    %79 = arith.addf %51, %78 : vector<16x128xf32>
    %80 = vector.extract_strided_slice %24 {offsets = [0, 32], sizes = [16, 16], strides = [1, 1]} : vector<16x384xf32> to vector<16x16xf32>
    %81 = vector.shape_cast %80 : vector<16x16xf32> to vector<2x8x16xf32>
    %82 = arith.truncf %81 : vector<2x8x16xf32> to vector<2x8x16xbf16>
    %83 = vector.extract_strided_slice %24 {offsets = [0, 160], sizes = [16, 16], strides = [1, 1]} : vector<16x384xf32> to vector<16x16xf32>
    %84 = vector.shape_cast %83 : vector<16x16xf32> to vector<2x8x16xf32>
    %85 = vector.extract_strided_slice %24 {offsets = [0, 288], sizes = [16, 16], strides = [1, 1]} : vector<16x384xf32> to vector<16x16xf32>
    %86 = vector.shape_cast %85 : vector<16x16xf32> to vector<2x8x16xf32>
    %87 = arith.truncf %86 : vector<2x8x16xf32> to vector<2x8x16xbf16>
    %88 = tpu.transpose %84, [0, 2, 1] : vector<2x8x16xf32> -> vector<2x16x8xf32>
    %89 = arith.truncf %88 : vector<2x16x8xf32> to vector<2x16x8xbf16>
    "tpu.trace_start"() <{level = 10 : i32, message = "bqd,bdk->bqk"}> : () -> ()
    %cst_23 = arith.constant dense<0.000000e+00> : vector<2x8x8xf32>
    %90 = tpu.matmul %82, %89, %cst_23 {dimension_numbers = #tpu.dot_dimension_numbers<[2], [1], [1], [2], [0, 0, 0, 1, 1, 2], [0], [0]>} : vector<2x8x16xbf16>, vector<2x16x8xbf16>, vector<2x8x8xf32> -> vector<2x8x8xf32>
    "tpu.trace_stop"() : () -> ()
    %cst_24 = arith.constant dense<0xFF800000> : vector<2x8xf32>
    %91 = vector.multi_reduction <maximumf>, %90, %cst_24 [2] : vector<2x8x8xf32> to vector<2x8xf32>
    %92 = vector.shape_cast %91 : vector<2x8xf32> to vector<2x8x1xf32>
    %93 = vector.broadcast %92 : vector<2x8x1xf32> to vector<2x8x8xf32>
    %94 = arith.subf %90, %93 : vector<2x8x8xf32>
    %95 = math.exp %94 : vector<2x8x8xf32>
    %cst_25 = arith.constant dense<0.000000e+00> : vector<2x8xf32>
    %96 = vector.multi_reduction <add>, %95, %cst_25 [2] : vector<2x8x8xf32> to vector<2x8xf32>
    %97 = vector.shape_cast %96 : vector<2x8xf32> to vector<2x8x1xf32>
    %98 = tpu.reciprocal %97 {approx = true} : vector<2x8x1xf32> -> vector<2x8x1xf32>
    %99 = vector.broadcast %98 : vector<2x8x1xf32> to vector<2x8x8xf32>
    %100 = arith.mulf %95, %99 : vector<2x8x8xf32>
    %101 = arith.truncf %100 : vector<2x8x8xf32> to vector<2x8x8xbf16>
    "tpu.trace_start"() <{level = 10 : i32, message = "bqk,bkd->bqd"}> : () -> ()
    %cst_26 = arith.constant dense<0.000000e+00> : vector<2x8x16xf32>
    %102 = tpu.matmul %101, %87, %cst_26 {dimension_numbers = #tpu.dot_dimension_numbers<[2], [1], [1], [2], [0, 0, 0, 1, 1, 2], [0], [0]>} : vector<2x8x8xbf16>, vector<2x8x16xbf16>, vector<2x8x16xf32> -> vector<2x8x16xf32>
    "tpu.trace_stop"() : () -> ()
    %103 = vector.shape_cast %102 : vector<2x8x16xf32> to vector<16x16xf32>
    %104 = arith.truncf %103 : vector<16x16xf32> to vector<16x16xbf16>
    %c32 = arith.constant 32 : index
    %c0_27 = arith.constant 0 : index
    %105 = vector.load %arg4[%c32, %c0_27] : memref<128x128xbf16, #tpu.memory_space<vmem>>, vector<16x128xbf16>
    %cst_28 = arith.constant dense<0.000000e+00> : vector<16x128xf32>
    %106 = tpu.matmul %104, %105, %cst_28 {dimension_numbers = #tpu.dot_dimension_numbers<[1], [0], [0], [1], [0, 0, 1, 1], [], []>} : vector<16x16xbf16>, vector<16x128xbf16>, vector<16x128xf32> -> vector<16x128xf32>
    %107 = arith.addf %79, %106 : vector<16x128xf32>
    %108 = vector.extract_strided_slice %24 {offsets = [0, 48], sizes = [16, 16], strides = [1, 1]} : vector<16x384xf32> to vector<16x16xf32>
    %109 = vector.shape_cast %108 : vector<16x16xf32> to vector<2x8x16xf32>
    %110 = arith.truncf %109 : vector<2x8x16xf32> to vector<2x8x16xbf16>
    %111 = vector.extract_strided_slice %24 {offsets = [0, 176], sizes = [16, 16], strides = [1, 1]} : vector<16x384xf32> to vector<16x16xf32>
    %112 = vector.shape_cast %111 : vector<16x16xf32> to vector<2x8x16xf32>
    %113 = vector.extract_strided_slice %24 {offsets = [0, 304], sizes = [16, 16], strides = [1, 1]} : vector<16x384xf32> to vector<16x16xf32>
    %114 = vector.shape_cast %113 : vector<16x16xf32> to vector<2x8x16xf32>
    %115 = arith.truncf %114 : vector<2x8x16xf32> to vector<2x8x16xbf16>
    %116 = tpu.transpose %112, [0, 2, 1] : vector<2x8x16xf32> -> vector<2x16x8xf32>
    %117 = arith.truncf %116 : vector<2x16x8xf32> to vector<2x16x8xbf16>
    "tpu.trace_start"() <{level = 10 : i32, message = "bqd,bdk->bqk"}> : () -> ()
    %cst_29 = arith.constant dense<0.000000e+00> : vector<2x8x8xf32>
    %118 = tpu.matmul %110, %117, %cst_29 {dimension_numbers = #tpu.dot_dimension_numbers<[2], [1], [1], [2], [0, 0, 0, 1, 1, 2], [0], [0]>} : vector<2x8x16xbf16>, vector<2x16x8xbf16>, vector<2x8x8xf32> -> vector<2x8x8xf32>
    "tpu.trace_stop"() : () -> ()
    %cst_30 = arith.constant dense<0xFF800000> : vector<2x8xf32>
    %119 = vector.multi_reduction <maximumf>, %118, %cst_30 [2] : vector<2x8x8xf32> to vector<2x8xf32>
    %120 = vector.shape_cast %119 : vector<2x8xf32> to vector<2x8x1xf32>
    %121 = vector.broadcast %120 : vector<2x8x1xf32> to vector<2x8x8xf32>
    %122 = arith.subf %118, %121 : vector<2x8x8xf32>
    %123 = math.exp %122 : vector<2x8x8xf32>
    %cst_31 = arith.constant dense<0.000000e+00> : vector<2x8xf32>
    %124 = vector.multi_reduction <add>, %123, %cst_31 [2] : vector<2x8x8xf32> to vector<2x8xf32>
    %125 = vector.shape_cast %124 : vector<2x8xf32> to vector<2x8x1xf32>
    %126 = tpu.reciprocal %125 {approx = true} : vector<2x8x1xf32> -> vector<2x8x1xf32>
    %127 = vector.broadcast %126 : vector<2x8x1xf32> to vector<2x8x8xf32>
    %128 = arith.mulf %123, %127 : vector<2x8x8xf32>
    %129 = arith.truncf %128 : vector<2x8x8xf32> to vector<2x8x8xbf16>
    "tpu.trace_start"() <{level = 10 : i32, message = "bqk,bkd->bqd"}> : () -> ()
    %cst_32 = arith.constant dense<0.000000e+00> : vector<2x8x16xf32>
    %130 = tpu.matmul %129, %115, %cst_32 {dimension_numbers = #tpu.dot_dimension_numbers<[2], [1], [1], [2], [0, 0, 0, 1, 1, 2], [0], [0]>} : vector<2x8x8xbf16>, vector<2x8x16xbf16>, vector<2x8x16xf32> -> vector<2x8x16xf32>
    "tpu.trace_stop"() : () -> ()
    %131 = vector.shape_cast %130 : vector<2x8x16xf32> to vector<16x16xf32>
    %132 = arith.truncf %131 : vector<16x16xf32> to vector<16x16xbf16>
    %c48 = arith.constant 48 : index
    %c0_33 = arith.constant 0 : index
    %133 = vector.load %arg4[%c48, %c0_33] : memref<128x128xbf16, #tpu.memory_space<vmem>>, vector<16x128xbf16>
    %cst_34 = arith.constant dense<0.000000e+00> : vector<16x128xf32>
    %134 = tpu.matmul %132, %133, %cst_34 {dimension_numbers = #tpu.dot_dimension_numbers<[1], [0], [0], [1], [0, 0, 1, 1], [], []>} : vector<16x16xbf16>, vector<16x128xbf16>, vector<16x128xf32> -> vector<16x128xf32>
    %135 = arith.addf %107, %134 : vector<16x128xf32>
    %136 = vector.extract_strided_slice %24 {offsets = [0, 64], sizes = [16, 16], strides = [1, 1]} : vector<16x384xf32> to vector<16x16xf32>
    %137 = vector.shape_cast %136 : vector<16x16xf32> to vector<2x8x16xf32>
    %138 = arith.truncf %137 : vector<2x8x16xf32> to vector<2x8x16xbf16>
    %139 = vector.extract_strided_slice %24 {offsets = [0, 192], sizes = [16, 16], strides = [1, 1]} : vector<16x384xf32> to vector<16x16xf32>
    %140 = vector.shape_cast %139 : vector<16x16xf32> to vector<2x8x16xf32>
    %141 = vector.extract_strided_slice %24 {offsets = [0, 320], sizes = [16, 16], strides = [1, 1]} : vector<16x384xf32> to vector<16x16xf32>
    %142 = vector.shape_cast %141 : vector<16x16xf32> to vector<2x8x16xf32>
    %143 = arith.truncf %142 : vector<2x8x16xf32> to vector<2x8x16xbf16>
    %144 = tpu.transpose %140, [0, 2, 1] : vector<2x8x16xf32> -> vector<2x16x8xf32>
    %145 = arith.truncf %144 : vector<2x16x8xf32> to vector<2x16x8xbf16>
    "tpu.trace_start"() <{level = 10 : i32, message = "bqd,bdk->bqk"}> : () -> ()
    %cst_35 = arith.constant dense<0.000000e+00> : vector<2x8x8xf32>
    %146 = tpu.matmul %138, %145, %cst_35 {dimension_numbers = #tpu.dot_dimension_numbers<[2], [1], [1], [2], [0, 0, 0, 1, 1, 2], [0], [0]>} : vector<2x8x16xbf16>, vector<2x16x8xbf16>, vector<2x8x8xf32> -> vector<2x8x8xf32>
    "tpu.trace_stop"() : () -> ()
    %cst_36 = arith.constant dense<0xFF800000> : vector<2x8xf32>
    %147 = vector.multi_reduction <maximumf>, %146, %cst_36 [2] : vector<2x8x8xf32> to vector<2x8xf32>
    %148 = vector.shape_cast %147 : vector<2x8xf32> to vector<2x8x1xf32>
    %149 = vector.broadcast %148 : vector<2x8x1xf32> to vector<2x8x8xf32>
    %150 = arith.subf %146, %149 : vector<2x8x8xf32>
    %151 = math.exp %150 : vector<2x8x8xf32>
    %cst_37 = arith.constant dense<0.000000e+00> : vector<2x8xf32>
    %152 = vector.multi_reduction <add>, %151, %cst_37 [2] : vector<2x8x8xf32> to vector<2x8xf32>
    %153 = vector.shape_cast %152 : vector<2x8xf32> to vector<2x8x1xf32>
    %154 = tpu.reciprocal %153 {approx = true} : vector<2x8x1xf32> -> vector<2x8x1xf32>
    %155 = vector.broadcast %154 : vector<2x8x1xf32> to vector<2x8x8xf32>
    %156 = arith.mulf %151, %155 : vector<2x8x8xf32>
    %157 = arith.truncf %156 : vector<2x8x8xf32> to vector<2x8x8xbf16>
    "tpu.trace_start"() <{level = 10 : i32, message = "bqk,bkd->bqd"}> : () -> ()
    %cst_38 = arith.constant dense<0.000000e+00> : vector<2x8x16xf32>
    %158 = tpu.matmul %157, %143, %cst_38 {dimension_numbers = #tpu.dot_dimension_numbers<[2], [1], [1], [2], [0, 0, 0, 1, 1, 2], [0], [0]>} : vector<2x8x8xbf16>, vector<2x8x16xbf16>, vector<2x8x16xf32> -> vector<2x8x16xf32>
    "tpu.trace_stop"() : () -> ()
    %159 = vector.shape_cast %158 : vector<2x8x16xf32> to vector<16x16xf32>
    %160 = arith.truncf %159 : vector<16x16xf32> to vector<16x16xbf16>
    %c64 = arith.constant 64 : index
    %c0_39 = arith.constant 0 : index
    %161 = vector.load %arg4[%c64, %c0_39] : memref<128x128xbf16, #tpu.memory_space<vmem>>, vector<16x128xbf16>
    %cst_40 = arith.constant dense<0.000000e+00> : vector<16x128xf32>
    %162 = tpu.matmul %160, %161, %cst_40 {dimension_numbers = #tpu.dot_dimension_numbers<[1], [0], [0], [1], [0, 0, 1, 1], [], []>} : vector<16x16xbf16>, vector<16x128xbf16>, vector<16x128xf32> -> vector<16x128xf32>
    %163 = arith.addf %135, %162 : vector<16x128xf32>
    %164 = vector.extract_strided_slice %24 {offsets = [0, 80], sizes = [16, 16], strides = [1, 1]} : vector<16x384xf32> to vector<16x16xf32>
    %165 = vector.shape_cast %164 : vector<16x16xf32> to vector<2x8x16xf32>
    %166 = arith.truncf %165 : vector<2x8x16xf32> to vector<2x8x16xbf16>
    %167 = vector.extract_strided_slice %24 {offsets = [0, 208], sizes = [16, 16], strides = [1, 1]} : vector<16x384xf32> to vector<16x16xf32>
    %168 = vector.shape_cast %167 : vector<16x16xf32> to vector<2x8x16xf32>
    %169 = vector.extract_strided_slice %24 {offsets = [0, 336], sizes = [16, 16], strides = [1, 1]} : vector<16x384xf32> to vector<16x16xf32>
    %170 = vector.shape_cast %169 : vector<16x16xf32> to vector<2x8x16xf32>
    %171 = arith.truncf %170 : vector<2x8x16xf32> to vector<2x8x16xbf16>
    %172 = tpu.transpose %168, [0, 2, 1] : vector<2x8x16xf32> -> vector<2x16x8xf32>
    %173 = arith.truncf %172 : vector<2x16x8xf32> to vector<2x16x8xbf16>
    "tpu.trace_start"() <{level = 10 : i32, message = "bqd,bdk->bqk"}> : () -> ()
    %cst_41 = arith.constant dense<0.000000e+00> : vector<2x8x8xf32>
    %174 = tpu.matmul %166, %173, %cst_41 {dimension_numbers = #tpu.dot_dimension_numbers<[2], [1], [1], [2], [0, 0, 0, 1, 1, 2], [0], [0]>} : vector<2x8x16xbf16>, vector<2x16x8xbf16>, vector<2x8x8xf32> -> vector<2x8x8xf32>
    "tpu.trace_stop"() : () -> ()
    %cst_42 = arith.constant dense<0xFF800000> : vector<2x8xf32>
    %175 = vector.multi_reduction <maximumf>, %174, %cst_42 [2] : vector<2x8x8xf32> to vector<2x8xf32>
    %176 = vector.shape_cast %175 : vector<2x8xf32> to vector<2x8x1xf32>
    %177 = vector.broadcast %176 : vector<2x8x1xf32> to vector<2x8x8xf32>
    %178 = arith.subf %174, %177 : vector<2x8x8xf32>
    %179 = math.exp %178 : vector<2x8x8xf32>
    %cst_43 = arith.constant dense<0.000000e+00> : vector<2x8xf32>
    %180 = vector.multi_reduction <add>, %179, %cst_43 [2] : vector<2x8x8xf32> to vector<2x8xf32>
    %181 = vector.shape_cast %180 : vector<2x8xf32> to vector<2x8x1xf32>
    %182 = tpu.reciprocal %181 {approx = true} : vector<2x8x1xf32> -> vector<2x8x1xf32>
    %183 = vector.broadcast %182 : vector<2x8x1xf32> to vector<2x8x8xf32>
    %184 = arith.mulf %179, %183 : vector<2x8x8xf32>
    %185 = arith.truncf %184 : vector<2x8x8xf32> to vector<2x8x8xbf16>
    "tpu.trace_start"() <{level = 10 : i32, message = "bqk,bkd->bqd"}> : () -> ()
    %cst_44 = arith.constant dense<0.000000e+00> : vector<2x8x16xf32>
    %186 = tpu.matmul %185, %171, %cst_44 {dimension_numbers = #tpu.dot_dimension_numbers<[2], [1], [1], [2], [0, 0, 0, 1, 1, 2], [0], [0]>} : vector<2x8x8xbf16>, vector<2x8x16xbf16>, vector<2x8x16xf32> -> vector<2x8x16xf32>
    "tpu.trace_stop"() : () -> ()
    %187 = vector.shape_cast %186 : vector<2x8x16xf32> to vector<16x16xf32>
    %188 = arith.truncf %187 : vector<16x16xf32> to vector<16x16xbf16>
    %c80 = arith.constant 80 : index
    %c0_45 = arith.constant 0 : index
    %189 = vector.load %arg4[%c80, %c0_45] : memref<128x128xbf16, #tpu.memory_space<vmem>>, vector<16x128xbf16>
    %cst_46 = arith.constant dense<0.000000e+00> : vector<16x128xf32>
    %190 = tpu.matmul %188, %189, %cst_46 {dimension_numbers = #tpu.dot_dimension_numbers<[1], [0], [0], [1], [0, 0, 1, 1], [], []>} : vector<16x16xbf16>, vector<16x128xbf16>, vector<16x128xf32> -> vector<16x128xf32>
    %191 = arith.addf %163, %190 : vector<16x128xf32>
    %192 = vector.extract_strided_slice %24 {offsets = [0, 96], sizes = [16, 16], strides = [1, 1]} : vector<16x384xf32> to vector<16x16xf32>
    %193 = vector.shape_cast %192 : vector<16x16xf32> to vector<2x8x16xf32>
    %194 = arith.truncf %193 : vector<2x8x16xf32> to vector<2x8x16xbf16>
    %195 = vector.extract_strided_slice %24 {offsets = [0, 224], sizes = [16, 16], strides = [1, 1]} : vector<16x384xf32> to vector<16x16xf32>
    %196 = vector.shape_cast %195 : vector<16x16xf32> to vector<2x8x16xf32>
    %197 = vector.extract_strided_slice %24 {offsets = [0, 352], sizes = [16, 16], strides = [1, 1]} : vector<16x384xf32> to vector<16x16xf32>
    %198 = vector.shape_cast %197 : vector<16x16xf32> to vector<2x8x16xf32>
    %199 = arith.truncf %198 : vector<2x8x16xf32> to vector<2x8x16xbf16>
    %200 = tpu.transpose %196, [0, 2, 1] : vector<2x8x16xf32> -> vector<2x16x8xf32>
    %201 = arith.truncf %200 : vector<2x16x8xf32> to vector<2x16x8xbf16>
    "tpu.trace_start"() <{level = 10 : i32, message = "bqd,bdk->bqk"}> : () -> ()
    %cst_47 = arith.constant dense<0.000000e+00> : vector<2x8x8xf32>
    %202 = tpu.matmul %194, %201, %cst_47 {dimension_numbers = #tpu.dot_dimension_numbers<[2], [1], [1], [2], [0, 0, 0, 1, 1, 2], [0], [0]>} : vector<2x8x16xbf16>, vector<2x16x8xbf16>, vector<2x8x8xf32> -> vector<2x8x8xf32>
    "tpu.trace_stop"() : () -> ()
    %cst_48 = arith.constant dense<0xFF800000> : vector<2x8xf32>
    %203 = vector.multi_reduction <maximumf>, %202, %cst_48 [2] : vector<2x8x8xf32> to vector<2x8xf32>
    %204 = vector.shape_cast %203 : vector<2x8xf32> to vector<2x8x1xf32>
    %205 = vector.broadcast %204 : vector<2x8x1xf32> to vector<2x8x8xf32>
    %206 = arith.subf %202, %205 : vector<2x8x8xf32>
    %207 = math.exp %206 : vector<2x8x8xf32>
    %cst_49 = arith.constant dense<0.000000e+00> : vector<2x8xf32>
    %208 = vector.multi_reduction <add>, %207, %cst_49 [2] : vector<2x8x8xf32> to vector<2x8xf32>
    %209 = vector.shape_cast %208 : vector<2x8xf32> to vector<2x8x1xf32>
    %210 = tpu.reciprocal %209 {approx = true} : vector<2x8x1xf32> -> vector<2x8x1xf32>
    %211 = vector.broadcast %210 : vector<2x8x1xf32> to vector<2x8x8xf32>
    %212 = arith.mulf %207, %211 : vector<2x8x8xf32>
    %213 = arith.truncf %212 : vector<2x8x8xf32> to vector<2x8x8xbf16>
    "tpu.trace_start"() <{level = 10 : i32, message = "bqk,bkd->bqd"}> : () -> ()
    %cst_50 = arith.constant dense<0.000000e+00> : vector<2x8x16xf32>
    %214 = tpu.matmul %213, %199, %cst_50 {dimension_numbers = #tpu.dot_dimension_numbers<[2], [1], [1], [2], [0, 0, 0, 1, 1, 2], [0], [0]>} : vector<2x8x8xbf16>, vector<2x8x16xbf16>, vector<2x8x16xf32> -> vector<2x8x16xf32>
    "tpu.trace_stop"() : () -> ()
    %215 = vector.shape_cast %214 : vector<2x8x16xf32> to vector<16x16xf32>
    %216 = arith.truncf %215 : vector<16x16xf32> to vector<16x16xbf16>
    %c96 = arith.constant 96 : index
    %c0_51 = arith.constant 0 : index
    %217 = vector.load %arg4[%c96, %c0_51] : memref<128x128xbf16, #tpu.memory_space<vmem>>, vector<16x128xbf16>
    %cst_52 = arith.constant dense<0.000000e+00> : vector<16x128xf32>
    %218 = tpu.matmul %216, %217, %cst_52 {dimension_numbers = #tpu.dot_dimension_numbers<[1], [0], [0], [1], [0, 0, 1, 1], [], []>} : vector<16x16xbf16>, vector<16x128xbf16>, vector<16x128xf32> -> vector<16x128xf32>
    %219 = arith.addf %191, %218 : vector<16x128xf32>
    %220 = vector.extract_strided_slice %24 {offsets = [0, 112], sizes = [16, 16], strides = [1, 1]} : vector<16x384xf32> to vector<16x16xf32>
    %221 = vector.shape_cast %220 : vector<16x16xf32> to vector<2x8x16xf32>
    %222 = arith.truncf %221 : vector<2x8x16xf32> to vector<2x8x16xbf16>
    %223 = vector.extract_strided_slice %24 {offsets = [0, 240], sizes = [16, 16], strides = [1, 1]} : vector<16x384xf32> to vector<16x16xf32>
    %224 = vector.shape_cast %223 : vector<16x16xf32> to vector<2x8x16xf32>
    %225 = vector.extract_strided_slice %24 {offsets = [0, 368], sizes = [16, 16], strides = [1, 1]} : vector<16x384xf32> to vector<16x16xf32>
    %226 = vector.shape_cast %225 : vector<16x16xf32> to vector<2x8x16xf32>
    %227 = arith.truncf %226 : vector<2x8x16xf32> to vector<2x8x16xbf16>
    %228 = tpu.transpose %224, [0, 2, 1] : vector<2x8x16xf32> -> vector<2x16x8xf32>
    %229 = arith.truncf %228 : vector<2x16x8xf32> to vector<2x16x8xbf16>
    "tpu.trace_start"() <{level = 10 : i32, message = "bqd,bdk->bqk"}> : () -> ()
    %cst_53 = arith.constant dense<0.000000e+00> : vector<2x8x8xf32>
    %230 = tpu.matmul %222, %229, %cst_53 {dimension_numbers = #tpu.dot_dimension_numbers<[2], [1], [1], [2], [0, 0, 0, 1, 1, 2], [0], [0]>} : vector<2x8x16xbf16>, vector<2x16x8xbf16>, vector<2x8x8xf32> -> vector<2x8x8xf32>
    "tpu.trace_stop"() : () -> ()
    %cst_54 = arith.constant dense<0xFF800000> : vector<2x8xf32>
    %231 = vector.multi_reduction <maximumf>, %230, %cst_54 [2] : vector<2x8x8xf32> to vector<2x8xf32>
    %232 = vector.shape_cast %231 : vector<2x8xf32> to vector<2x8x1xf32>
    %233 = vector.broadcast %232 : vector<2x8x1xf32> to vector<2x8x8xf32>
    %234 = arith.subf %230, %233 : vector<2x8x8xf32>
    %235 = math.exp %234 : vector<2x8x8xf32>
    %cst_55 = arith.constant dense<0.000000e+00> : vector<2x8xf32>
    %236 = vector.multi_reduction <add>, %235, %cst_55 [2] : vector<2x8x8xf32> to vector<2x8xf32>
    %237 = vector.shape_cast %236 : vector<2x8xf32> to vector<2x8x1xf32>
    %238 = tpu.reciprocal %237 {approx = true} : vector<2x8x1xf32> -> vector<2x8x1xf32>
    %239 = vector.broadcast %238 : vector<2x8x1xf32> to vector<2x8x8xf32>
    %240 = arith.mulf %235, %239 : vector<2x8x8xf32>
    %241 = arith.truncf %240 : vector<2x8x8xf32> to vector<2x8x8xbf16>
    "tpu.trace_start"() <{level = 10 : i32, message = "bqk,bkd->bqd"}> : () -> ()
    %cst_56 = arith.constant dense<0.000000e+00> : vector<2x8x16xf32>
    %242 = tpu.matmul %241, %227, %cst_56 {dimension_numbers = #tpu.dot_dimension_numbers<[2], [1], [1], [2], [0, 0, 0, 1, 1, 2], [0], [0]>} : vector<2x8x8xbf16>, vector<2x8x16xbf16>, vector<2x8x16xf32> -> vector<2x8x16xf32>
    "tpu.trace_stop"() : () -> ()
    %243 = vector.shape_cast %242 : vector<2x8x16xf32> to vector<16x16xf32>
    %244 = arith.truncf %243 : vector<16x16xf32> to vector<16x16xbf16>
    %c112 = arith.constant 112 : index
    %c0_57 = arith.constant 0 : index
    %245 = vector.load %arg4[%c112, %c0_57] : memref<128x128xbf16, #tpu.memory_space<vmem>>, vector<16x128xbf16>
    %cst_58 = arith.constant dense<0.000000e+00> : vector<16x128xf32>
    %246 = tpu.matmul %244, %245, %cst_58 {dimension_numbers = #tpu.dot_dimension_numbers<[1], [0], [0], [1], [0, 0, 1, 1], [], []>} : vector<16x16xbf16>, vector<16x128xbf16>, vector<16x128xf32> -> vector<16x128xf32>
    %247 = arith.addf %219, %246 : vector<16x128xf32>
    %c0_59 = arith.constant 0 : index
    %c0_60 = arith.constant 0 : index
    %248 = vector.load %arg5[%c0_59, %c0_60] : memref<1x128xf32, #tpu.memory_space<vmem>>, vector<1x128xf32>
    %249 = vector.broadcast %248 : vector<1x128xf32> to vector<16x128xf32>
    %250 = arith.addf %247, %249 : vector<16x128xf32>
    %251 = arith.addf %0, %250 : vector<16x128xf32>
    %cst_61 = arith.constant dense<0.000000e+00> : vector<16xf32>
    %252 = vector.multi_reduction <add>, %251, %cst_61 [1] : vector<16x128xf32> to vector<16xf32>
    %253 = vector.shape_cast %252 : vector<16xf32> to vector<16x1xf32>
    %cst_62 = arith.constant 1.280000e+02 : f32
    %254 = vector.broadcast %cst_62 : f32 to vector<16x1xf32>
    %255 = arith.divf %253, %254 : vector<16x1xf32>
    %256 = vector.broadcast %255 : vector<16x1xf32> to vector<16x128xf32>
    %257 = arith.subf %251, %256 : vector<16x128xf32>
    %258 = arith.mulf %257, %257 : vector<16x128xf32>
    %cst_63 = arith.constant dense<0.000000e+00> : vector<16xf32>
    %259 = vector.multi_reduction <add>, %258, %cst_63 [1] : vector<16x128xf32> to vector<16xf32>
    %260 = vector.shape_cast %259 : vector<16xf32> to vector<16x1xf32>
    %cst_64 = arith.constant 1.280000e+02 : f32
    %261 = vector.broadcast %cst_64 : f32 to vector<16x1xf32>
    %262 = arith.divf %260, %261 : vector<16x1xf32>
    %263 = vector.broadcast %255 : vector<16x1xf32> to vector<16x128xf32>
    %264 = arith.subf %251, %263 : vector<16x128xf32>
    %cst_65 = arith.constant 9.99999974E-6 : f32
    %265 = vector.broadcast %cst_65 : f32 to vector<16x1xf32>
    %266 = arith.addf %262, %265 : vector<16x1xf32>
    %267 = math.rsqrt %266 : vector<16x1xf32>
    %268 = vector.broadcast %267 : vector<16x1xf32> to vector<16x128xf32>
    %269 = arith.mulf %264, %268 : vector<16x128xf32>
    %270 = arith.truncf %269 : vector<16x128xf32> to vector<16x128xbf16>
    %c0_66 = arith.constant 0 : index
    %c0_67 = arith.constant 0 : index
    %271 = vector.load %arg6[%c0_66, %c0_67] : memref<128x512xbf16, #tpu.memory_space<vmem>>, vector<128x512xbf16>
    %cst_68 = arith.constant dense<0.000000e+00> : vector<16x512xf32>
    %272 = tpu.matmul %270, %271, %cst_68 {dimension_numbers = #tpu.dot_dimension_numbers<[1], [0], [0], [1], [0, 0, 1, 1], [], []>} : vector<16x128xbf16>, vector<128x512xbf16>, vector<16x512xf32> -> vector<16x512xf32>
    %c0_69 = arith.constant 0 : index
    %c0_70 = arith.constant 0 : index
    %273 = vector.load %arg7[%c0_69, %c0_70] : memref<1x512xf32, #tpu.memory_space<vmem>>, vector<1x512xf32>
    %274 = vector.broadcast %273 : vector<1x512xf32> to vector<16x512xf32>
    %275 = arith.addf %272, %274 : vector<16x512xf32>
    %cst_71 = arith.constant 0.000000e+00 : f32
    %276 = vector.broadcast %cst_71 : f32 to vector<16x512xf32>
    %277 = arith.maximumf %275, %276 : vector<16x512xf32>
    %278 = arith.truncf %277 : vector<16x512xf32> to vector<16x512xbf16>
    %c0_72 = arith.constant 0 : index
    %c0_73 = arith.constant 0 : index
    %279 = vector.load %arg8[%c0_72, %c0_73] : memref<512x128xbf16, #tpu.memory_space<vmem>>, vector<512x128xbf16>
    %cst_74 = arith.constant dense<0.000000e+00> : vector<16x128xf32>
    %280 = tpu.matmul %278, %279, %cst_74 {dimension_numbers = #tpu.dot_dimension_numbers<[1], [0], [0], [1], [0, 0, 1, 1], [], []>} : vector<16x512xbf16>, vector<512x128xbf16>, vector<16x128xf32> -> vector<16x128xf32>
    %c0_75 = arith.constant 0 : index
    %c0_76 = arith.constant 0 : index
    %281 = vector.load %arg9[%c0_75, %c0_76] : memref<1x128xf32, #tpu.memory_space<vmem>>, vector<1x128xf32>
    %282 = vector.broadcast %281 : vector<1x128xf32> to vector<16x128xf32>
    %283 = arith.addf %280, %282 : vector<16x128xf32>
    %284 = arith.addf %251, %283 : vector<16x128xf32>
    %c0_77 = arith.constant 0 : index
    %c0_78 = arith.constant 0 : index
    %285 = vector.load %arg10[%c0_77, %c0_78] : memref<16x128xf32, #tpu.memory_space<vmem>>, vector<16x128xf32>
    tpu.vector_store %arg10[%c0_77, %c0_78], %284 {strides = array<i32>} : memref<16x128xf32, #tpu.memory_space<vmem>>, vector<16x128xf32>,
    return
  }
  func.func @transform_0(%arg0: i32) -> (i32, i32) {
    %c0_i32 = arith.constant 0 : i32
    %c0_i32_0 = arith.constant 0 : i32
    return %arg0, %c0_i32 : i32, i32
  }
  func.func @transform_1(%arg0: i32) -> (i32, i32) {
    %c0_i32 = arith.constant 0 : i32
    %c0_i32_0 = arith.constant 0 : i32
    %c0_i32_1 = arith.constant 0 : i32
    return %c0_i32, %c0_i32_0 : i32, i32
  }
  func.func @transform_2(%arg0: i32) -> (i32, i32) {
    %c0_i32 = arith.constant 0 : i32
    %c0_i32_0 = arith.constant 0 : i32
    %c0_i32_1 = arith.constant 0 : i32
    return %c0_i32, %c0_i32_0 : i32, i32
  }
  func.func @transform_3(%arg0: i32) -> (i32, i32) {
    %c0_i32 = arith.constant 0 : i32
    %c0_i32_0 = arith.constant 0 : i32
    %c0_i32_1 = arith.constant 0 : i32
    return %c0_i32, %c0_i32_0 : i32, i32
  }
  func.func @transform_4(%arg0: i32) -> (i32, i32) {
    %c0_i32 = arith.constant 0 : i32
    %c0_i32_0 = arith.constant 0 : i32
    %c0_i32_1 = arith.constant 0 : i32
    return %c0_i32, %c0_i32_0 : i32, i32
  }
  func.func @transform_5(%arg0: i32) -> (i32, i32) {
    %c0_i32 = arith.constant 0 : i32
    %c0_i32_0 = arith.constant 0 : i32
    %c0_i32_1 = arith.constant 0 : i32
    return %c0_i32, %c0_i32_0 : i32, i32
  }
  func.func @transform_6(%arg0: i32) -> (i32, i32) {
    %c0_i32 = arith.constant 0 : i32
    %c0_i32_0 = arith.constant 0 : i32
    %c0_i32_1 = arith.constant 0 : i32
    return %c0_i32, %c0_i32_0 : i32, i32
  }
  func.func @transform_7(%arg0: i32) -> (i32, i32) {
    %c0_i32 = arith.constant 0 : i32
    %c0_i32_0 = arith.constant 0 : i32
    %c0_i32_1 = arith.constant 0 : i32
    return %c0_i32, %c0_i32_0 : i32, i32
  }
  func.func @transform_8(%arg0: i32) -> (i32, i32) {
    %c0_i32 = arith.constant 0 : i32
    %c0_i32_0 = arith.constant 0 : i32
    %c0_i32_1 = arith.constant 0 : i32
    return %c0_i32, %c0_i32_0 : i32, i32
  }
  func.func @transform_9(%arg0: i32) -> (i32, i32) {
    %c0_i32 = arith.constant 0 : i32
    %c0_i32_0 = arith.constant 0 : i32
    return %arg0, %c0_i32 : i32, i32
  }
}

</mosaic_0001>

<bundles_post_ra>
// kernel: transformer_encoder_layer.1
= control target key start
LH: loop header
LB: loop body
LE: loop exit
PB: predicated region body
PF: predicated region fallthrough
CT: control target
= control target key end

     0   :  { %14 = vsyncpa [#allocation3], 0  ;;  %s5267_s0 = inlined_call_operand.vmem [shape: f32[16,128], index: 0, kind: input, shape index: {}, may-alias: {0,9}]   ;;  %s5268_s1 = inlined_call_operand.hbm [shape: bf16[128,384], index: 1, kind: input, shape index: {}]   ;;  %s5269_s2 = inlined_call_operand.vmem [shape: f32[1,384], index: 2, kind: input, shape index: {}]   ;;  %s5270_s3 = inlined_call_operand.hbm [shape: bf16[128,128], index: 3, kind: input, shape index: {}]   ;;  %s5271_s4 = inlined_call_operand.vmem [shape: f32[1,128], index: 4, kind: input, shape index: {}]   ;;  %s5272_s5 = inlined_call_operand.hbm [shape: bf16[128,512], index: 5, kind: input, shape index: {}]   ;;  %s5273_s6 = inlined_call_operand.vmem [shape: f32[1,512], index: 6, kind: input, shape index: {}]   ;;  %s5274_s7 = inlined_call_operand.hbm [shape: bf16[512,128], index: 7, kind: input, shape index: {}]   ;;  %s5275_s8 = inlined_call_operand.vmem [shape: f32[1,128], index: 8, kind: input, shape index: {}]   ;;  %s5276_s9 = inlined_call_operand.vmem [shape: f32[16,128], index: 9, kind: output, shape index: {}, may-alias: {0,9}]  }
   0x1   :  { %15 = vsyncpa [#allocation5], 0 }
   0x2   :  { %16 = vsyncpa [#allocation8], 0  ;;  %s4736_s30 = smov [#allocation4]   ;;  %s4642_s13 = scalar_lea.hbm %s5270_s3, 1024 }
   0x3   :  { %s38_s10 = sshll.u32 %s4736_s30, 4  ;;  %p4643_p0 = scmp.ne.s32.totalorder %s5270_s3, %s4642_s13  ;;  %s39_s10 = int_to_ptr.vmem [resolvable:$true] %s38_s10 }
   0x4   :  { %p4646_p1 = scmp.lt.u32.totalorder %s4642_s13, %s5270_s3 }
   0x6   :  { %p4648_p2 = pnand %p4646_p1, %p4643_p0 }
   0x8   :  { %4651 = shalt.err (!%p4648_p2)
}
   0x9   :  { %s4652_s18 = scalar_lea.vmem %s39_s10, 1024  ;;  %p4657_p4 = scmp.lt.s32.totalorder %s39_s10, %s39_s10 }
   0xa   :  { %p4653_p3 = scmp.ne.s32.totalorder %s39_s10, %s4652_s18  ;;  %p4658_p5 = scmp.lt.s32.totalorder %s4652_s18, %s4652_s18 }
   0xc   :  { %p4659_p6 = por %p4658_p5, %p4657_p4 }
   0xe   :  { %p4660_p7 = pnand %p4659_p6, %p4653_p3 }
  0x10   :  { %4663 = shalt.err (!%p4660_p7)
}
  0x11   :  { %s4737_s19 = smov 64   ;;  %s4738_s20 = smov 4  }
  0x12   :  { %44 = dma.hbm_to_vmem [thread:$0]  %s5270_s3, 1024, %s39_s10, [#allocation5], %s4737_s19, %s4737_s19, %s4738_s20  }
  0x13   :  { %s4739_s23 = smov [#allocation2]   ;;  %s4664_s27 = scalar_lea.hbm %s5268_s1, 3072 }
  0x14   :  { %s24_s24 = sshll.u32 %s4739_s23, 4  ;;  %p4665_p8 = scmp.ne.s32.totalorder %s5268_s1, %s4664_s27  ;;  %s25_s24 = int_to_ptr.vmem [resolvable:$true] %s24_s24 }
  0x15   :  { %p4668_p9 = scmp.lt.u32.totalorder %s4664_s27, %s5268_s1 }
  0x17   :  { %p4670_p10 = pnand %p4668_p9, %p4665_p8 }
  0x19   :  { %4673 = shalt.err (!%p4670_p10)
}
  0x1a   :  { %s4674_s12 = scalar_lea.vmem %s25_s24, 3072  ;;  %p4679_p12 = scmp.lt.s32.totalorder %s25_s24, %s25_s24 }
  0x1b   :  { %p4675_p11 = scmp.ne.s32.totalorder %s25_s24, %s4674_s12  ;;  %p4680_p13 = scmp.lt.s32.totalorder %s4674_s12, %s4674_s12 }
  0x1d   :  { %p4681_p0 = por %p4680_p13, %p4679_p12 }
  0x1f   :  { %p4682_p1 = pnand %p4681_p0, %p4675_p11 }
  0x21   :  { %4685 = shalt.err (!%p4682_p1)
}
  0x22   :  { %s4740_s3 = smov 192   ;;  %s4741_s10 = smov 12  }
  0x23   :  { %30 = dma.hbm_to_vmem [thread:$0]  %s5268_s1, 3072, %s25_s24, [#allocation3], %s4740_s3, %s4740_s3, %s4741_s10  }
  0x24   :  { %s4742_s15 = smov [#allocation6]   ;;  %s4686_s21 = scalar_lea.hbm %s5272_s5, 4096 }
  0x25   :  { %s52_s16 = sshll.u32 %s4742_s15, 4  ;;  %p4687_p2 = scmp.ne.s32.totalorder %s5272_s5, %s4686_s21  ;;  %s53_s16 = int_to_ptr.vmem [resolvable:$true] %s52_s16 }
  0x26   :  { %p4690_p3 = scmp.lt.u32.totalorder %s4686_s21, %s5272_s5 }
  0x28   :  { %p4692_p4 = pnand %p4690_p3, %p4687_p2 }
  0x2a   :  { %4695 = shalt.err (!%p4692_p4)
}
  0x2b   :  { %s4696_s27 = scalar_lea.vmem %s53_s16, 4096  ;;  %p4701_p6 = scmp.lt.s32.totalorder %s53_s16, %s53_s16 }
  0x2c   :  { %p4697_p5 = scmp.ne.s32.totalorder %s53_s16, %s4696_s27  ;;  %p4702_p7 = scmp.lt.s32.totalorder %s4696_s27, %s4696_s27 }
  0x2e   :  { %p4703_p8 = por %p4702_p7, %p4701_p6 }
  0x30   :  { %p4704_p9 = pnand %p4703_p8, %p4697_p5 }
  0x32   :  { %4707 = shalt.err (!%p4704_p9)
}
  0x33   :  { %s4743_s1 = smov 256   ;;  %s4744_s24 = smov 16  }
  0x34   :  { %58 = dma.hbm_to_vmem [thread:$0]  %s5272_s5, 4096, %s53_s16, [#allocation5], %s4743_s1, %s4743_s1, %s4744_s24  }
  0x35   :  { %s4745_s30 = smov [#allocation7]   ;;  %s4708_s10 = scalar_lea.hbm %s5274_s7, 4096 }
  0x36   :  { %s66_s11 = sshll.u32 %s4745_s30, 4  ;;  %p4709_p10 = scmp.ne.s32.totalorder %s5274_s7, %s4708_s10  ;;  %s67_s11 = int_to_ptr.vmem [resolvable:$true] %s66_s11 }
  0x37   :  { %p4712_p11 = scmp.lt.u32.totalorder %s4708_s10, %s5274_s7 }
  0x39   :  { %p4714_p12 = pnand %p4712_p11, %p4709_p10 }
  0x3b   :  { %4717 = shalt.err (!%p4714_p12)
}
  0x3c   :  { %s4718_s18 = scalar_lea.vmem %s67_s11, 4096  ;;  %p4723_p0 = scmp.lt.s32.totalorder %s67_s11, %s67_s11 }
  0x3d   :  { %p4719_p13 = scmp.ne.s32.totalorder %s67_s11, %s4718_s18  ;;  %p4724_p1 = scmp.lt.s32.totalorder %s4718_s18, %s4718_s18 }
  0x3f   :  { %p4725_p2 = por %p4724_p1, %p4723_p0 }
  0x41   :  { %p4726_p3 = pnand %p4725_p2, %p4719_p13 }
  0x43   :  { %4729 = shalt.err (!%p4726_p3)
}
  0x44   :  { %72 = dma.hbm_to_vmem [thread:$0]  %s5274_s7, 4096, %s67_s11, [#allocation8], %s4737_s19, %s4737_s19, %s4738_s20  }
  0x45   :  { %4730 = dma.done.wait [#allocation3], 3072  }
  0x46   :  { %4731 = vsyncadd [#allocation3], 4294964224 }
  0x47   :  { %4732 = dma.done.wait [#allocation5], 5120  }
  0x48   :  { %4733 = vsyncadd [#allocation5], 4294962176 }
  0x49   :  { %4734 = dma.done.wait [#allocation8], 4096  }
  0x4a   :  { %4735 = vsyncadd [#allocation8], 4294963200  ;;  %v88_v0 = vld [vmem:[%s5267_s0] sm:$0xff]  ;;  %v89_v1 = vld [vmem:[%s5267_s0 + $0x8] sm:$0xff]  ;;  %v4746_v4 = vmov 0.0   ;;  %v4747_v33 = vmov 0   ;;  %v148_v47 = vlaneseq }
  0x4b   :  { %90 = vadd.xlane.f32.xlu0 %v88_v0  ;;  %v4448_v2 = vld [vmem:[#allocation2 + $0x4] ss:$12 sps:$4 sm:$0xff]   ;;  %v4450_v3 = vld [vmem:[#allocation2] ss:$12 sps:$4 sm:$0xff]   ;;  %4039 = vmatprep.subr.bf16.mxu1 %v4746_v4  ;;  %v4451_v5 = vld [vmem:[#allocation2 + $0x8] ss:$12 sps:$4 sm:$0xff]  }
  0x4c   :  { %v4452_v6 = vld [vmem:[#allocation2 + $0x1c] ss:$12 sps:$4 sm:$0xff]   ;;  %v4454_v7 = vld [vmem:[#allocation2 + $0x18] ss:$12 sps:$4 sm:$0xff]   ;;  %291 = vmatprep.subr.bf16.mxu0 %v4448_v2  ;;  %v4455_v8 = vld [vmem:[#allocation2 + $0x20] ss:$12 sps:$4 sm:$0xff]   ;;  %4040 = vmatpush3.bf16.msra.mxu1 %v4451_v5 }
  0x4d   :  { %v4456_v9 = vld [vmem:[#allocation2 + $0x34] ss:$12 sps:$4 sm:$0xff]   ;;  %292 = vmatpush1.bf16.msra.mxu0 %v4450_v3  ;;  %4041 = vmatprep.subr.bf16.mxu1 %v4746_v4  ;;  %v4458_v18 = vld [vmem:[#allocation2 + $0x30] ss:$12 sps:$4 sm:$0xff]   ;;  %v4459_v19 = vld [vmem:[#allocation2 + $0x38] ss:$12 sps:$4 sm:$0xff]  }
  0x4e   :  { %293 = vmatprep.subr.bf16.mxu0 %v4452_v6  ;;  %v4460_v20 = vld [vmem:[#allocation2 + $0x4c] ss:$12 sps:$4 sm:$0xff]   ;;  %v4462_v21 = vld [vmem:[#allocation2 + $0x48] ss:$12 sps:$4 sm:$0xff]   ;;  %v4463_v22 = vld [vmem:[#allocation2 + $0x50] ss:$12 sps:$4 sm:$0xff]   ;;  %323 = vmatprep.mubr.bf16.mxu0 %v4747_v33 }
  0x4f   :  { %92 = vadd.xlane.f32.xlu0 %v89_v1  ;;  %v4464_v23 = vld [vmem:[#allocation2 + $0x64] ss:$12 sps:$4 sm:$0xff]   ;;  %v4466_v24 = vld [vmem:[#allocation2 + $0x60] ss:$12 sps:$4 sm:$0xff]   ;;  %v4467_v25 = vld [vmem:[#allocation2 + $0x68] ss:$12 sps:$4 sm:$0xff]  }
  0x50   :  { %4042 = vmatpush3.bf16.msra.mxu1 %v4455_v8  ;;  %v4468_v26 = vld [vmem:[#allocation2 + $0x7c] ss:$12 sps:$4 sm:$0xff]   ;;  %v4470_v27 = vld [vmem:[#allocation2 + $0x78] ss:$12 sps:$4 sm:$0xff]   ;;  %v4471_v28 = vld [vmem:[#allocation2 + $0x80] ss:$12 sps:$4 sm:$0xff]  }
  0x51   :  { %294 = vmatpush1.bf16.msra.mxu0 %v4454_v7  ;;  %4043 = vmatprep.subr.bf16.mxu1 %v4746_v4  ;;  %v4472_v29 = vld [vmem:[#allocation2 + $0x94] ss:$12 sps:$4 sm:$0xff]   ;;  %v4474_v30 = vld [vmem:[#allocation2 + $0x90] ss:$12 sps:$4 sm:$0xff]   ;;  %v4475_v31 = vld [vmem:[#allocation2 + $0x98] ss:$12 sps:$4 sm:$0xff]  }
  0x52   :  { %295 = vmatprep.subr.bf16.mxu0 %v4456_v9  ;;  %v4476_v32 = vld [vmem:[#allocation2 + $0xac] ss:$12 sps:$4 sm:$0xff]   ;;  %vm4748_vm0 = vmmov 0   ;;  %v4478_v34 = vld [vmem:[#allocation2 + $0xa8] ss:$12 sps:$4 sm:$0xff]   ;;  %v4887_v48 = vshrl.u32 %v148_v47, 7 }
  0x53   :  { %4055 = vmatprep.mubr.msk.bf16.mxu1 %vm4748_vm0, %v4746_v4  ;;  %v4479_v35 = vld [vmem:[#allocation2 + $0xb0] ss:$12 sps:$4 sm:$0xff]   ;;  %v146_v50 = vld [vmem:[%s5269_s2] sm:$0x7]  ;;  %vm445_vm1 = vcmask 130048   ;;  %vm560_vm2 = vcmask 1043456  }
  0x54   :  { %4044 = vmatpush3.bf16.msra.mxu1 %v4459_v19  ;;  %v154_v49 = vsub.s32 1, %v4887_v48  ;;  %v158_v63 = vsub.s32 2, %v4887_v48  ;;  %vm532_vm3 = vcmask 64512   ;;  %s4749_s2 = smov 112   ;;  %s4750_s26 = smov 96  }
  0x55   :  { %296 = vmatpush1.bf16.msra.mxu0 %v4458_v18  ;;  %4045 = vmatprep.subr.bf16.mxu1 %v4746_v4  ;;  %s4751_s27 = smov 80   ;;  %s4752_s1 = smov 48  }
  0x56   :  { %297 = vmatprep.subr.bf16.mxu0 %v4460_v20  ;;  %v155_v53 = vrot.slane %v146_v50, %v154_v49 }
  0x58   :  { %4046 = vmatpush3.bf16.msra.mxu1 %v4463_v22 }
  0x59   :  { %298 = vmatpush1.bf16.msra.mxu0 %v4462_v21  ;;  %4047 = vmatprep.subr.bf16.mxu1 %v4746_v4 }
  0x5a   :  { %299 = vmatprep.subr.bf16.mxu0 %v4464_v23 }
  0x5c   :  { %4048 = vmatpush3.bf16.msra.mxu1 %v4467_v25 }
  0x5d   :  { %300 = vmatpush1.bf16.msra.mxu0 %v4466_v24  ;;  %4049 = vmatprep.subr.bf16.mxu1 %v4746_v4 }
  0x5e   :  { %301 = vmatprep.subr.bf16.mxu0 %v4468_v26 }
  0x60   :  { %4050 = vmatpush3.bf16.msra.mxu1 %v4471_v28 }
  0x61   :  { %302 = vmatpush1.bf16.msra.mxu0 %v4470_v27  ;;  %4051 = vmatprep.subr.bf16.mxu1 %v4746_v4 }
  0x62   :  { %303 = vmatprep.subr.bf16.mxu0 %v4472_v29 }
  0x64   :  { %4052 = vmatpush3.bf16.msra.mxu1 %v4475_v31 }
  0x65   :  { %304 = vmatpush1.bf16.msra.mxu0 %v4474_v30  ;;  %4053 = vmatprep.subr.bf16.mxu1 %v4746_v4 }
  0x66   :  { %305 = vmatprep.subr.bf16.mxu0 %v4476_v32 }
  0x68   :  { %4054 = vmatpush3.bf16.msra.mxu1 %v4479_v35 }
  0x69   :  { %306 = vmatpush1.bf16.msra.mxu0 %v4478_v34  ;;  %4065 = vmatprep.subr.bf16.mxu1 %v4746_v4 }
  0x6a   :  { %4059 = vmatprep.subr.bf16.mxu0 %v4746_v4 }
  0xd8   :  { %v91_v10 = vpop.xlane.xlu0 %90 }
  0xd9   :  { %v95_v11 = vmul.f32 0.0078125, %v91_v10 }
  0xdb   :  { %v4868_v12 = vsub.f32 %v88_v0, %v95_v11  ;;  %v150_v0 = vsub.s32 0, %v4887_v48 }
  0xdc   :  { %v93_v13 = vpop.xlane.xlu0 %92 }
  0xdd   :  { %v96_v14 = vmul.f32 0.0078125, %v93_v13  ;;  %v99_v15 = vmul.f32 %v4868_v12, %v4868_v12  ;;  %v151_v3 = vrot.slane %v146_v50, %v150_v0 }
  0xdf   :  { %v98_v16 = vsub.f32 %v89_v1, %v96_v14  ;;  %101 = vadd.xlane.f32.xlu1 %v99_v15  ;;  %v159_v1 = vrot.slane %v146_v50, %v158_v63 }
  0xe1   :  { %v100_v17 = vmul.f32 %v98_v16, %v98_v16 }
  0xe3   :  { %103 = vadd.xlane.f32.xlu1 %v100_v17 }
 0x16c   :  { %v102_v36 = vpop.xlane.xlu1 %101 }
 0x16d   :  { %v105_v37 = vmul.f32 0.0078125, %v102_v36 }
 0x16f   :  { %v107_v38 = vadd.f32 1e-05, %v105_v37 }
 0x170   :  { %v104_v39 = vpop.xlane.xlu1 %103 }
 0x171   :  { %v106_v40 = vmul.f32 0.0078125, %v104_v39  ;;  %4568 = vrsqrt.f32 %v107_v38 }
 0x173   :  { %v108_v41 = vadd.f32 1e-05, %v106_v40 }
 0x175   :  { %4570 = vrsqrt.f32 %v108_v41 }
 0x17b   :  { %v4569_v42 = vpop.eup %4568 }
 0x17c   :  { %v111_v44 = vmul.f32 %v4569_v42, %v4868_v12 }
 0x17f   :  { %v4571_v43 = vpop.eup %4570 }
 0x180   :  { %v112_v45 = vmul.f32 %v4571_v43, %v98_v16 }
 0x182   :  { %v113_v46 = vpack.c.bf16 %v112_v45, %v111_v44 }
 0x184   :  { %324 = vmatmul.mubr.bf16.vlgmr.msra.gmra.mrb[0].mxu0 %v113_v46  ;;  %4056 = vmatmul.mubr.bf16.vlgmr.msra.gmra.mrb[0].mxu1 %v113_v46 }
 0x185   :  { %4061 = vmatprep.mubr.msk.bf16.mxu0 %vm4748_vm0, %v4746_v4  ;;  %4067 = vmatprep.mubr.msk.bf16.mxu1 %vm4748_vm0, %v4746_v4 }
 0x257   :  { %v325_v51 = vpop.f32.mrb[0].mxu0  ;;  %v368_v52 = vpop.f32.mrb[0].mxu1 }
 0x258   :  { %v327_v54 = vpop.f32.mrb[1].mxu0  ;;  %v4057_v55 = vpop.f32.mrb[1].mxu1  ;;  %v369_v5 = vadd.f32 %v368_v52, %v159_v1  ;;  %v326_v12 = vadd.f32 %v325_v51, %v151_v3 }
 0x259   :  { %v329_v56 = vpop.f32.mrb[2].mxu0  ;;  %v371_v57 = vpop.f32.mrb[2].mxu1  ;;  %v328_v60 = vadd.f32 %v327_v54, %v155_v53 }
 0x25a   :  { %v331_v58 = vpop.f32.mrb[3].mxu0  ;;  %v4058_v59 = vpop.f32.mrb[3].mxu1  ;;  %v372_v6 = vadd.f32 %v371_v57, %v159_v1  ;;  %v330_v13 = vadd.f32 %v329_v56, %v151_v3  ;;  %v4904_v16 = vpack.c.bf16 %v369_v5, %v369_v5  ;;  %v4908_v18 = vpack.c.bf16 %v326_v12, %v326_v12 }
 0x25b   :  { %v332_v61 = vadd.f32 %v331_v58, %v155_v53 }
 0x25c   :  { %v4906_v17 = vpack.c.bf16 %v372_v6, %v372_v6  ;;  %v4910_v19 = vpack.c.bf16 %v330_v13, %v330_v13  ;;  %v562_v20 = vsel %vm560_vm2, %v4904_v16, 0 }
 0x25d   :  { %v4895_v62 = vpack.i.bf16 %v332_v61, %v328_v60 }
 0x25e   :  { %v608_v21 = vsel %vm560_vm2, %v4906_v17, 0 }
 0x25f   :  { %4318 = vxpose.xlu0.b32.start.end [1/1] (short) (narrow) %v4895_v62, 16 }
 0x2df   :  { %v4319_v2 = vpop.trf.xlu0 }
 0x2e0   :  { %v4323_v7 = vunpack.i.h.bf16 %v4319_v2  ;;  %v4320_v8 = vunpack.i.l.bf16 %v4319_v2 }
 0x2e3   :  { %v4324_v9 = vpop.trf.xlu0 }
 0x2e4   :  { %v4328_v10 = vunpack.i.h.bf16 %v4324_v9  ;;  %v4325_v11 = vunpack.i.l.bf16 %v4324_v9 }
 0x2e6   :  { %v443_v14 = vpack.c.bf16 %v4325_v11, %v4320_v8  ;;  %v444_v15 = vpack.c.bf16 %v4328_v10, %v4323_v7 }
 0x2e8   :  { %4060 = vmatpush3.bf16.msra.mxu0 %v443_v14  ;;  %4066 = vmatpush3.bf16.msra.mxu1 %v444_v15 }
 0x2e9   :  { %4071 = vmatprep.subr.bf16.mxu0 %v4746_v4  ;;  %4077 = vmatprep.subr.bf16.mxu1 %v4746_v4 }
 0x2eb   :  { %4062 = vmatmul.mubr.msk.bf16.vlgmr.msra.gmra.mrb[4].mxu0 %vm445_vm1, %v4908_v18  ;;  %4068 = vmatmul.mubr.msk.bf16.vlgmr.msra.gmra.mrb[4].mxu1 %vm445_vm1, %v4910_v19 }
 0x2ec   :  { %4072 = vmatpush3.bf16.msra.mxu0 %v562_v20  ;;  %4078 = vmatpush3.bf16.msra.mxu1 %v608_v21 }
 0x2ed   :  { %4073 = vmatprep.mubr.msk.bf16.mxu0 %vm4748_vm0, %v4746_v4  ;;  %4079 = vmatprep.mubr.msk.bf16.mxu1 %vm4748_vm0, %v4746_v4 }
 0x2ee   :  { %4083 = vmatprep.subr.bf16.mxu0 %v4746_v4  ;;  %4089 = vmatprep.subr.bf16.mxu1 %v4746_v4 }
 0x3be   :  { %v483_v22 = vpop.f32.mrb[4].mxu0  ;;  %v526_v23 = vpop.f32.mrb[4].mxu1 }
 0x3bf   :  { %v4063_v24 = vpop.f32.mrb[5].mxu0  ;;  %v4069_v25 = vpop.f32.mrb[5].mxu1  ;;  %v533_v26 = vsel %vm532_vm3, %v483_v22, -inf  ;;  %v536_v31 = vsel %vm532_vm3, %v526_v23, -inf }
 0x3c0   :  { %v529_v27 = vpop.f32.mrb[6].mxu1  ;;  %534 = vmax.xlane.f32.xlu1 %v533_v26  ;;  %v486_v28 = vpop.f32.mrb[6].mxu0 }
 0x3c1   :  { %v4064_v29 = vpop.f32.mrb[7].mxu0  ;;  %v4070_v30 = vpop.f32.mrb[7].mxu1 }
 0x3c4   :  { %537 = vmax.xlane.f32.xlu1 %v536_v31 }
 0x3d5   :  { %4330 = vrot.lane.b32.xlu1 %v4895_v62, %s4749_s2 }
 0x44d   :  { %v535_v32 = vpop.xlane.xlu1 %534 }
 0x44e   :  { %v539_v34 = vsub.f32 %v483_v22, %v535_v32 }
 0x450   :  { %v541_v35 = vmul.f32 1.442695, %v539_v34 }
 0x451   :  { %v538_v36 = vpop.xlane.xlu1 %537 }
 0x452   :  { %4572 = vpow2.f32 %v541_v35  ;;  %v540_v37 = vsub.f32 %v526_v23, %v538_v36 }
 0x454   :  { %v543_v38 = vmul.f32 1.442695, %v540_v37 }
 0x455   :  { %v4331_v43 = vpop.permute.xlu1 %4330 }
 0x456   :  { %4574 = vpow2.f32 %v543_v38 }
 0x45c   :  { %v4573_v39 = vpop.eup %4572 }
 0x45d   :  { %v545_v40 = vsel %vm532_vm3, %v4573_v39, 0.0 }
 0x45e   :  { %546 = vadd.xlane.f32.xlu1 %v545_v40 }
 0x460   :  { %v4575_v41 = vpop.eup %4574 }
 0x461   :  { %v548_v42 = vsel %vm532_vm3, %v4575_v41, 0.0 }
 0x462   :  { %549 = vadd.xlane.f32.xlu0 %v548_v42 }
 0x46f   :  { %728 = vrot.lane.b32.xlu1 %v4908_v18, %s4749_s2 }
 0x473   :  { %774 = vrot.lane.b32.xlu1 %v4910_v19, %s4749_s2 }
 0x49c   :  { %4335 = vxpose.xlu1.b32.start.end [1/1] (short) (narrow) %v4331_v43, 16 }
 0x4be   :  { %893 = vrot.lane.b32.xlu1 %v4906_v17, %s4749_s2 }
 0x4eb   :  { %v547_v44 = vpop.xlane.xlu1 %546 }
 0x4ec   :  { %4576 = vrcp.f32 %v547_v44 }
 0x4ef   :  { %v550_v45 = vpop.xlane.xlu0 %549  ;;  %v729_v54 = vpop.permute.xlu1 %728 }
 0x4f0   :  { %4578 = vrcp.f32 %v550_v45 }
 0x4f3   :  { %v775_v55 = vpop.permute.xlu1 %774 }
 0x4f6   :  { %v4577_v46 = vpop.eup %4576 }
 0x4f7   :  { %v553_v47 = vmul.f32 %v4577_v46, %v4573_v39 }
 0x4f9   :  { %v555_v50 = vpack.c.bf16 %v553_v47, %v553_v47 }
 0x4fa   :  { %v4579_v51 = vpop.eup %4578 }
 0x4fb   :  { %v554_v52 = vmul.f32 %v4579_v51, %v4575_v41  ;;  %4074 = vmatmul.mubr.msk.bf16.vlgmr.msra.gmra.mrb[8].mxu0 %vm532_vm3, %v555_v50 }
 0x4fc   :  { %4085 = vmatprep.mubr.msk.bf16.mxu0 %vm4748_vm0, %v4746_v4 }
 0x4fd   :  { %v556_v53 = vpack.c.bf16 %v554_v52, %v554_v52  ;;  %v4480_v52 = vld [vmem:[#allocation4] sm:$0xff]  }
 0x4ff   :  { %4080 = vmatmul.mubr.msk.bf16.vlgmr.msra.gmra.mrb[8].mxu1 %vm532_vm3, %v556_v53 }
 0x500   :  { %4091 = vmatprep.mubr.msk.bf16.mxu1 %vm4748_vm0, %v4746_v4 }
 0x51c   :  { %v4336_v56 = vpop.trf.xlu1 }
 0x51d   :  { %v4340_v57 = vunpack.i.h.bf16 %v4336_v56  ;;  %v4337_v58 = vunpack.i.l.bf16 %v4336_v56 }
 0x520   :  { %v4341_v59 = vpop.trf.xlu1 }
 0x521   :  { %v4345_v60 = vunpack.i.h.bf16 %v4341_v59  ;;  %v4342_v61 = vunpack.i.l.bf16 %v4341_v59 }
 0x523   :  { %v725_v1 = vpack.c.bf16 %v4342_v61, %v4337_v58  ;;  %v726_v2 = vpack.c.bf16 %v4345_v60, %v4340_v57 }
 0x525   :  { %4084 = vmatpush3.bf16.msra.mxu0 %v725_v1  ;;  %4090 = vmatpush3.bf16.msra.mxu1 %v726_v2 }
 0x526   :  { %4101 = vmatprep.subr.bf16.mxu1 %v4746_v4  ;;  %4095 = vmatprep.subr.bf16.mxu0 %v4746_v4 }
 0x528   :  { %4086 = vmatmul.mubr.msk.bf16.vlgmr.msra.gmra.mrb[12].mxu0 %vm445_vm1, %v729_v54  ;;  %4092 = vmatmul.mubr.msk.bf16.vlgmr.msra.gmra.mrb[12].mxu1 %vm445_vm1, %v775_v55  ;;  %v4481_v54 = vld [vmem:[#allocation4 + $0x8] sm:$0xff]  }
 0x529   :  { %4097 = vmatprep.mubr.msk.bf16.mxu0 %vm4748_vm0, %v4746_v4  ;;  %4103 = vmatprep.mubr.msk.bf16.mxu1 %vm4748_vm0, %v4746_v4 }
 0x530   :  { %v894_v3 = vpop.permute.xlu1 %893 }
 0x531   :  { %v899_v5 = vsel %vm560_vm2, %v894_v3, 0 }
 0x532   :  { %4102 = vmatpush3.bf16.msra.mxu1 %v899_v5 }
 0x533   :  { %4113 = vmatprep.subr.bf16.mxu1 %v4746_v4 }
 0x5ce   :  { %v4956_v6 = vpop.f32.mrb[8].mxu0 }
 0x5cf   :  { %v4075_v7 = vpop.f32.mrb[9].mxu0 }
 0x5d0   :  { %v601_v8 = vpop.f32.mrb[10].mxu0 }
 0x5d1   :  { %v4076_v9 = vpop.f32.mrb[11].mxu0 }
 0x5d2   :  { %v644_v10 = vpop.f32.mrb[8].mxu1 }
 0x5d3   :  { %v650_v11 = vpack.c.bf16 %v644_v10, %v4956_v6  ;;  %v4081_v12 = vpop.f32.mrb[9].mxu1 }
 0x5d4   :  { %v647_v13 = vpop.f32.mrb[10].mxu1 }
 0x5d5   :  { %v4082_v14 = vpop.f32.mrb[11].mxu1 }
 0x5fb   :  { %v767_v15 = vpop.f32.mrb[12].mxu0  ;;  %v813_v20 = vpop.f32.mrb[12].mxu1 }
 0x5fc   :  { %v4087_v21 = vpop.f32.mrb[13].mxu0  ;;  %v4093_v22 = vpop.f32.mrb[13].mxu1  ;;  %v819_v23 = vsel %vm532_vm3, %v767_v15, -inf  ;;  %v822_v28 = vsel %vm532_vm3, %v813_v20, -inf }
 0x5fd   :  { %v816_v24 = vpop.f32.mrb[14].mxu1  ;;  %820 = vmax.xlane.f32.xlu0 %v819_v23  ;;  %v770_v25 = vpop.f32.mrb[14].mxu0 }
 0x5fe   :  { %v4088_v26 = vpop.f32.mrb[15].mxu0  ;;  %v4094_v27 = vpop.f32.mrb[15].mxu1 }
 0x601   :  { %823 = vmax.xlane.f32.xlu0 %v822_v28 }
 0x68a   :  { %v821_v29 = vpop.xlane.xlu0 %820 }
 0x68b   :  { %v825_v30 = vsub.f32 %v767_v15, %v821_v29 }
 0x68d   :  { %v827_v31 = vmul.f32 1.442695, %v825_v30 }
 0x68e   :  { %v824_v32 = vpop.xlane.xlu0 %823 }
 0x68f   :  { %4580 = vpow2.f32 %v827_v31  ;;  %v826_v34 = vsub.f32 %v813_v20, %v824_v32 }
 0x691   :  { %v829_v35 = vmul.f32 1.442695, %v826_v34 }
 0x693   :  { %4582 = vpow2.f32 %v829_v35 }
 0x699   :  { %v4581_v36 = vpop.eup %4580 }
 0x69a   :  { %v831_v37 = vsel %vm532_vm3, %v4581_v36, 0.0 }
 0x69b   :  { %832 = vadd.xlane.f32.xlu0 %v831_v37 }
 0x69d   :  { %v4583_v38 = vpop.eup %4582 }
 0x69e   :  { %v834_v39 = vsel %vm532_vm3, %v4583_v38, 0.0 }
 0x69f   :  { %835 = vadd.xlane.f32.xlu0 %v834_v39 }
 0x6b5   :  { %844 = vrot.lane.b32.xlu0 %v4904_v16, %s4749_s2 }
 0x6b9   :  { %4347 = vrot.lane.b32.xlu0 %v4895_v62, %s4750_s26 }
 0x6bd   :  { %1116 = vrot.lane.b32.xlu0 %v4908_v18, %s4750_s26 }
 0x6c1   :  { %1161 = vrot.lane.b32.xlu0 %v4910_v19, %s4750_s26 }
 0x728   :  { %v833_v40 = vpop.xlane.xlu0 %832 }
 0x729   :  { %4584 = vrcp.f32 %v833_v40 }
 0x72c   :  { %v836_v41 = vpop.xlane.xlu0 %835 }
 0x72d   :  { %4586 = vrcp.f32 %v836_v41 }
 0x730   :  { %v845_v42 = vpop.permute.xlu0 %844 }
 0x731   :  { %v850_v43 = vsel %vm560_vm2, %v845_v42, 0 }
 0x732   :  { %4096 = vmatpush3.bf16.msra.mxu0 %v850_v43 }
 0x733   :  { %v4585_v44 = vpop.eup %4584  ;;  %4107 = vmatprep.subr.bf16.mxu0 %v4746_v4 }
 0x734   :  { %v839_v45 = vmul.f32 %v4585_v44, %v4581_v36  ;;  %v4348_v46 = vpop.permute.xlu0 %4347 }
 0x735   :  { %4352 = vxpose.xlu0.b32.start.end [1/1] (short) (narrow) %v4348_v46, 16 }
 0x736   :  { %v841_v47 = vpack.c.bf16 %v839_v45, %v839_v45 }
 0x737   :  { %v4587_v50 = vpop.eup %4586 }
 0x738   :  { %v840_v51 = vmul.f32 %v4587_v50, %v4583_v38  ;;  %4098 = vmatmul.mubr.msk.bf16.vlgmr.msra.gmra.mrb[16].mxu0 %vm532_vm3, %v841_v47  ;;  %v1117_v55 = vpop.permute.xlu0 %1116 }
 0x739   :  { %4109 = vmatprep.mubr.msk.bf16.mxu0 %vm4748_vm0, %v4746_v4  ;;  %4108 = vmatpush3.bf16.msra.mxu0 %v4481_v54 }
 0x73a   :  { %v842_v53 = vpack.c.bf16 %v840_v51, %v840_v51  ;;  %4119 = vmatprep.subr.bf16.mxu0 %v4746_v4 }
 0x73c   :  { %4104 = vmatmul.mubr.msk.bf16.vlgmr.msra.gmra.mrb[16].mxu1 %vm532_vm3, %v842_v53  ;;  %v1162_v56 = vpop.permute.xlu0 %1161 }
 0x73d   :  { %4114 = vmatpush3.bf16.msra.mxu1 %v4480_v52  ;;  %4115 = vmatprep.mubr.msk.bf16.mxu1 %vm4748_vm0, %v4746_v4 }
 0x73e   :  { %4125 = vmatprep.subr.bf16.mxu1 %v4746_v4 }
 0x744   :  { %4116 = vmatmul.mubr.msk.bf16.vlgmr.msra.gmra.mrb[20].mxu1 %vm445_vm1, %v650_v11 }
 0x745   :  { %4127 = vmatprep.mubr.msk.bf16.mxu1 %vm4748_vm0, %v4746_v4 }
 0x7b5   :  { %v4353_v57 = vpop.trf.xlu0 }
 0x7b6   :  { %v4357_v58 = vunpack.i.h.bf16 %v4353_v57  ;;  %v4354_v3 = vunpack.i.l.bf16 %v4353_v57 }
 0x7b9   :  { %v4358_v59 = vpop.trf.xlu0 }
 0x7ba   :  { %v4362_v60 = vunpack.i.h.bf16 %v4358_v59  ;;  %v4359_v5 = vunpack.i.l.bf16 %v4358_v59 }
 0x7bc   :  { %v1115_v61 = vpack.c.bf16 %v4362_v60, %v4357_v58  ;;  %v1114_v12 = vpack.c.bf16 %v4359_v5, %v4354_v3  ;;  %v4482_v3 = vld [vmem:[#allocation4 + $0x10] sm:$0xff]  }
 0x7be   :  { %4126 = vmatpush3.bf16.msra.mxu1 %v1115_v61 }
 0x7bf   :  { %4137 = vmatprep.subr.bf16.mxu1 %v4746_v4 }
 0x7c1   :  { %4128 = vmatmul.mubr.msk.bf16.vlgmr.msra.gmra.mrb[24].mxu1 %vm445_vm1, %v1162_v56 }
 0x7c2   :  { %4139 = vmatprep.mubr.msk.bf16.mxu1 %vm4748_vm0, %v4746_v4 }
 0x80b   :  { %v886_v1 = vpop.f32.mrb[16].mxu0 }
 0x80c   :  { %v4099_v2 = vpop.f32.mrb[17].mxu0 }
 0x80d   :  { %v889_v6 = vpop.f32.mrb[18].mxu0 }
 0x80e   :  { %v4100_v7 = vpop.f32.mrb[19].mxu0 }
 0x80f   :  { %v935_v8 = vpop.f32.mrb[16].mxu1 }
 0x810   :  { %v941_v9 = vpack.c.bf16 %v935_v8, %v886_v1  ;;  %v4105_v10 = vpop.f32.mrb[17].mxu1 }
 0x811   :  { %v938_v11 = vpop.f32.mrb[18].mxu1 }
 0x812   :  { %v4106_v13 = vpop.f32.mrb[19].mxu1  ;;  %4110 = vmatmul.mubr.msk.bf16.vlgmr.msra.gmra.mrb[20].mxu0 %vm445_vm1, %v941_v9 }
 0x813   :  { %4120 = vmatpush3.bf16.msra.mxu0 %v1114_v12  ;;  %4121 = vmatprep.mubr.msk.bf16.mxu0 %vm4748_vm0, %v4746_v4 }
 0x814   :  { %4131 = vmatprep.subr.bf16.mxu0 %v4746_v4 }
 0x817   :  { %v1037_v14 = vpop.f32.mrb[20].mxu1 }
 0x818   :  { %v4117_v15 = vpop.f32.mrb[21].mxu1 }
 0x819   :  { %v1040_v20 = vpop.f32.mrb[22].mxu1 }
 0x81a   :  { %v4118_v21 = vpop.f32.mrb[23].mxu1  ;;  %4122 = vmatmul.mubr.msk.bf16.vlgmr.msra.gmra.mrb[24].mxu0 %vm445_vm1, %v1117_v55 }
 0x81b   :  { %4133 = vmatprep.mubr.msk.bf16.mxu0 %vm4748_vm0, %v4746_v4 }
 0x894   :  { %v1200_v22 = vpop.f32.mrb[24].mxu1 }
 0x895   :  { %v4129_v23 = vpop.f32.mrb[25].mxu1  ;;  %v1209_v24 = vsel %vm532_vm3, %v1200_v22, -inf }
 0x896   :  { %1210 = vmax.xlane.f32.xlu0 %v1209_v24  ;;  %v1203_v25 = vpop.f32.mrb[26].mxu1 }
 0x897   :  { %v4130_v26 = vpop.f32.mrb[27].mxu1 }
 0x8ac   :  { %1453 = vrot.lane.b32.xlu0 %v4908_v18, %s4751_s27 }
 0x8e5   :  { %v987_v27 = vpop.f32.mrb[20].mxu0 }
 0x8e6   :  { %v4998_v28 = vadd.f32 %v1037_v14, %v987_v27  ;;  %v4111_v29 = vpop.f32.mrb[21].mxu0 }
 0x8e7   :  { %v990_v30 = vpop.f32.mrb[22].mxu0 }
 0x8e8   :  { %v5000_v31 = vadd.f32 %v1040_v20, %v990_v30  ;;  %v4112_v32 = vpop.f32.mrb[23].mxu0 }
 0x8ed   :  { %v1155_v34 = vpop.f32.mrb[24].mxu0 }
 0x8ee   :  { %v4123_v35 = vpop.f32.mrb[25].mxu0  ;;  %v1206_v36 = vsel %vm532_vm3, %v1155_v34, -inf }
 0x8ef   :  { %1207 = vmax.xlane.f32.xlu1 %v1206_v36  ;;  %v1158_v37 = vpop.f32.mrb[26].mxu0 }
 0x8f0   :  { %v4124_v38 = vpop.f32.mrb[27].mxu0 }
 0x923   :  { %v1211_v39 = vpop.xlane.xlu0 %1210 }
 0x924   :  { %v1213_v40 = vsub.f32 %v1200_v22, %v1211_v39 }
 0x926   :  { %v1216_v41 = vmul.f32 1.442695, %v1213_v40 }
 0x927   :  { %v1454_v11 = vpop.permute.xlu0 %1453 }
 0x928   :  { %4588 = vpow2.f32 %v1216_v41 }
 0x932   :  { %v4589_v42 = vpop.eup %4588 }
 0x933   :  { %v1221_v43 = vsel %vm532_vm3, %v4589_v42, 0.0 }
 0x934   :  { %1222 = vadd.xlane.f32.xlu1 %v1221_v43 }
 0x945   :  { %1230 = vrot.lane.b32.xlu1 %v4904_v16, %s4750_s26 }
 0x97c   :  { %v1208_v44 = vpop.xlane.xlu1 %1207 }
 0x97d   :  { %v1212_v45 = vsub.f32 %v1155_v34, %v1208_v44 }
 0x97f   :  { %v1214_v46 = vmul.f32 1.442695, %v1212_v45 }
 0x981   :  { %4590 = vpow2.f32 %v1214_v46 }
 0x98b   :  { %v4591_v47 = vpop.eup %4590 }
 0x98c   :  { %v1218_v50 = vsel %vm532_vm3, %v4591_v47, 0.0 }
 0x98d   :  { %1219 = vadd.xlane.f32.xlu1 %v1218_v50 }
 0x99e   :  { %1278 = vrot.lane.b32.xlu1 %v4906_v17, %s4750_s26 }
 0x9a2   :  { %4364 = vrot.lane.b32.xlu1 %v4895_v62, %s4751_s27 }
 0x9a6   :  { %1498 = vrot.lane.b32.xlu1 %v4910_v19, %s4751_s27 }
 0x9c1   :  { %v1223_v51 = vpop.xlane.xlu1 %1222 }
 0x9c2   :  { %4592 = vrcp.f32 %v1223_v51 }
 0x9c5   :  { %v1231_v52 = vpop.permute.xlu1 %1230 }
 0x9c6   :  { %v1236_v53 = vsel %vm560_vm2, %v1231_v52, 0 }
 0x9c7   :  { %4132 = vmatpush3.bf16.msra.mxu0 %v1236_v53 }
 0x9c8   :  { %4143 = vmatprep.subr.bf16.mxu0 %v4746_v4 }
 0x9cc   :  { %v4593_v54 = vpop.eup %4592 }
 0x9cd   :  { %v1227_v56 = vmul.f32 %v4593_v54, %v4589_v42 }
 0x9cf   :  { %v1229_v59 = vpack.c.bf16 %v1227_v56, %v1227_v56 }
 0xa1a   :  { %v1220_v55 = vpop.xlane.xlu1 %1219 }
 0xa1b   :  { %4594 = vrcp.f32 %v1220_v55 }
 0xa1e   :  { %v1279_v57 = vpop.permute.xlu1 %1278 }
 0xa1f   :  { %v1284_v58 = vsel %vm560_vm2, %v1279_v57, 0 }
 0xa20   :  { %4138 = vmatpush3.bf16.msra.mxu1 %v1284_v58 }
 0xa21   :  { %4149 = vmatprep.subr.bf16.mxu1 %v4746_v4 }
 0xa22   :  { %v4365_v60 = vpop.permute.xlu1 %4364 }
 0xa23   :  { %4140 = vmatmul.mubr.msk.bf16.vlgmr.msra.gmra.mrb[28].mxu1 %vm532_vm3, %v1229_v59  ;;  %4369 = vxpose.xlu1.b32.start.end [1/1] (short) (narrow) %v4365_v60, 16 }
 0xa24   :  { %4151 = vmatprep.mubr.msk.bf16.mxu1 %vm4748_vm0, %v4746_v4 }
 0xa25   :  { %v4595_v61 = vpop.eup %4594 }
 0xa26   :  { %v1226_v1 = vmul.f32 %v4595_v61, %v4591_v47  ;;  %v1499_v5 = vpop.permute.xlu1 %1498 }
 0xa28   :  { %v1228_v2 = vpack.c.bf16 %v1226_v1, %v1226_v1 }
 0xa2a   :  { %4134 = vmatmul.mubr.msk.bf16.vlgmr.msra.gmra.mrb[28].mxu0 %vm532_vm3, %v1228_v2 }
 0xa2b   :  { %4145 = vmatprep.mubr.msk.bf16.mxu0 %vm4748_vm0, %v4746_v4  ;;  %4144 = vmatpush3.bf16.msra.mxu0 %v4482_v3 }
 0xa2c   :  { %4155 = vmatprep.subr.bf16.mxu0 %v4746_v4 }
 0xaa3   :  { %v4370_v6 = vpop.trf.xlu1 }
 0xaa4   :  { %v4371_v7 = vunpack.i.l.bf16 %v4370_v6  ;;  %v4374_v20 = vunpack.i.h.bf16 %v4370_v6 }
 0xaa7   :  { %v4375_v8 = vpop.trf.xlu1 }
 0xaa8   :  { %v4376_v9 = vunpack.i.l.bf16 %v4375_v8  ;;  %v4379_v21 = vunpack.i.h.bf16 %v4375_v8 }
 0xaaa   :  { %v1451_v10 = vpack.c.bf16 %v4376_v9, %v4371_v7  ;;  %v1452_v26 = vpack.c.bf16 %v4379_v21, %v4374_v20 }
 0xaac   :  { %4150 = vmatpush3.bf16.msra.mxu1 %v1451_v10  ;;  %v4483_v10 = vld [vmem:[#allocation4 + $0x18] sm:$0xff]  }
 0xaad   :  { %4161 = vmatprep.subr.bf16.mxu1 %v4746_v4 }
 0xaaf   :  { %4152 = vmatmul.mubr.msk.bf16.vlgmr.msra.gmra.mrb[32].mxu1 %vm445_vm1, %v1454_v11 }
 0xab0   :  { %4163 = vmatprep.mubr.msk.bf16.mxu1 %vm4748_vm0, %v4746_v4 }
 0xaf6   :  { %v1320_v12 = vpop.f32.mrb[28].mxu1 }
 0xaf7   :  { %v4141_v13 = vpop.f32.mrb[29].mxu1 }
 0xaf8   :  { %v1323_v14 = vpop.f32.mrb[30].mxu1 }
 0xaf9   :  { %v4142_v15 = vpop.f32.mrb[31].mxu1 }
 0xafd   :  { %v1272_v22 = vpop.f32.mrb[28].mxu0 }
 0xafe   :  { %v1326_v23 = vpack.c.bf16 %v1320_v12, %v1272_v22  ;;  %v4135_v24 = vpop.f32.mrb[29].mxu0 }
 0xaff   :  { %v1275_v25 = vpop.f32.mrb[30].mxu0 }
 0xb00   :  { %v4136_v27 = vpop.f32.mrb[31].mxu0  ;;  %4146 = vmatmul.mubr.msk.bf16.vlgmr.msra.gmra.mrb[32].mxu0 %vm445_vm1, %v1326_v23 }
 0xb01   :  { %4156 = vmatpush3.bf16.msra.mxu0 %v1452_v26  ;;  %4157 = vmatprep.mubr.msk.bf16.mxu0 %vm4748_vm0, %v4746_v4 }
 0xb02   :  { %4167 = vmatprep.subr.bf16.mxu0 %v4746_v4 }
 0xb08   :  { %4158 = vmatmul.mubr.msk.bf16.vlgmr.msra.gmra.mrb[36].mxu0 %vm445_vm1, %v1499_v5 }
 0xb09   :  { %4169 = vmatprep.mubr.msk.bf16.mxu0 %vm4748_vm0, %v4746_v4 }
 0xb82   :  { %v1492_v29 = vpop.f32.mrb[32].mxu1 }
 0xb83   :  { %v4153_v30 = vpop.f32.mrb[33].mxu1  ;;  %v1543_v32 = vsel %vm532_vm3, %v1492_v29, -inf }
 0xb84   :  { %1544 = vmax.xlane.f32.xlu0 %v1543_v32  ;;  %v1495_v34 = vpop.f32.mrb[34].mxu1 }
 0xb85   :  { %v4154_v35 = vpop.f32.mrb[35].mxu1 }
 0xbd3   :  { %v1372_v36 = vpop.f32.mrb[32].mxu0 }
 0xbd4   :  { %v5037_v37 = vadd.f32 %v1372_v36, %v4998_v28  ;;  %v4147_v38 = vpop.f32.mrb[33].mxu0 }
 0xbd5   :  { %v1375_v39 = vpop.f32.mrb[34].mxu0 }
 0xbd6   :  { %v5040_v40 = vadd.f32 %v1375_v39, %v5000_v31  ;;  %v4148_v41 = vpop.f32.mrb[35].mxu0 }
 0xbdb   :  { %v1537_v42 = vpop.f32.mrb[36].mxu0 }
 0xbdc   :  { %v4159_v43 = vpop.f32.mrb[37].mxu0  ;;  %v1546_v44 = vsel %vm532_vm3, %v1537_v42, -inf }
 0xbdd   :  { %1547 = vmax.xlane.f32.xlu1 %v1546_v44  ;;  %v1540_v45 = vpop.f32.mrb[38].mxu0 }
 0xbde   :  { %v4160_v46 = vpop.f32.mrb[39].mxu0 }
 0xbee   :  { %1835 = vrot.lane.b32.xlu1 %v4910_v19, %s4737_s19 }
 0xc11   :  { %v1545_v47 = vpop.xlane.xlu0 %1544 }
 0xc12   :  { %v1549_v50 = vsub.f32 %v1492_v29, %v1545_v47 }
 0xc14   :  { %v1551_v28 = vmul.f32 1.442695, %v1549_v50 }
 0xc16   :  { %4596 = vpow2.f32 %v1551_v28 }
 0xc20   :  { %v4597_v51 = vpop.eup %4596 }
 0xc21   :  { %v1555_v52 = vsel %vm532_vm3, %v4597_v51, 0.0 }
 0xc22   :  { %1556 = vadd.xlane.f32.xlu0 %v1555_v52 }
 0xc38   :  { %1567 = vrot.lane.b32.xlu0 %v4904_v16, %s4751_s27 }
 0xc6a   :  { %v1548_v31 = vpop.xlane.xlu1 %1547 }
 0xc6b   :  { %v1550_v53 = vsub.f32 %v1537_v42, %v1548_v31 }
 0xc6d   :  { %v1553_v54 = vmul.f32 1.442695, %v1550_v53 }
 0xc6e   :  { %v1836_v36 = vpop.permute.xlu1 %1835 }
 0xc6f   :  { %4598 = vpow2.f32 %v1553_v54 }
 0xc79   :  { %v4599_v55 = vpop.eup %4598 }
 0xc7a   :  { %v1558_v56 = vsel %vm532_vm3, %v4599_v55, 0.0 }
 0xc7b   :  { %1559 = vadd.xlane.f32.xlu0 %v1558_v56 }
 0xc91   :  { %1615 = vrot.lane.b32.xlu0 %v4906_v17, %s4751_s27 }
 0xc95   :  { %4381 = vrot.lane.b32.xlu0 %v4895_v62, %s4737_s19 }
 0xc99   :  { %1790 = vrot.lane.b32.xlu0 %v4908_v18, %s4737_s19 }
 0xcaf   :  { %v1557_v57 = vpop.xlane.xlu0 %1556 }
 0xcb0   :  { %4600 = vrcp.f32 %v1557_v57 }
 0xcb3   :  { %v1568_v58 = vpop.permute.xlu0 %1567 }
 0xcb4   :  { %v1573_v59 = vsel %vm560_vm2, %v1568_v58, 0 }
 0xcb5   :  { %4162 = vmatpush3.bf16.msra.mxu1 %v1573_v59 }
 0xcb6   :  { %4173 = vmatprep.subr.bf16.mxu1 %v4746_v4 }
 0xcba   :  { %v4601_v60 = vpop.eup %4600 }
 0xcbb   :  { %v1563_v61 = vmul.f32 %v4601_v60, %v4597_v51 }
 0xcbd   :  { %v1565_v1 = vpack.c.bf16 %v1563_v61, %v1563_v61 }
 0xcbf   :  { %4164 = vmatmul.mubr.msk.bf16.vlgmr.msra.gmra.mrb[36].mxu1 %vm532_vm3, %v1565_v1 }
 0xcc0   :  { %4175 = vmatprep.mubr.msk.bf16.mxu1 %vm4748_vm0, %v4746_v4  ;;  %4174 = vmatpush3.bf16.msra.mxu1 %v4483_v10 }
 0xcc1   :  { %4185 = vmatprep.subr.bf16.mxu1 %v4746_v4 }
 0xd08   :  { %v1560_v2 = vpop.xlane.xlu0 %1559 }
 0xd09   :  { %4602 = vrcp.f32 %v1560_v2 }
 0xd0c   :  { %v1616_v3 = vpop.permute.xlu0 %1615 }
 0xd0d   :  { %v1621_v5 = vsel %vm560_vm2, %v1616_v3, 0 }
 0xd0e   :  { %4168 = vmatpush3.bf16.msra.mxu0 %v1621_v5 }
 0xd0f   :  { %4179 = vmatprep.subr.bf16.mxu0 %v4746_v4 }
 0xd10   :  { %v4382_v6 = vpop.permute.xlu0 %4381 }
 0xd11   :  { %4386 = vxpose.xlu0.b32.start.end [1/1] (short) (narrow) %v4382_v6, 16 }
 0xd13   :  { %v4603_v7 = vpop.eup %4602 }
 0xd14   :  { %v1564_v8 = vmul.f32 %v4603_v7, %v4599_v55  ;;  %v1791_v11 = vpop.permute.xlu0 %1790 }
 0xd16   :  { %v1566_v9 = vpack.c.bf16 %v1564_v8, %v1564_v8 }
 0xd18   :  { %4170 = vmatmul.mubr.msk.bf16.vlgmr.msra.gmra.mrb[40].mxu0 %vm532_vm3, %v1566_v9 }
 0xd19   :  { %4181 = vmatprep.mubr.msk.bf16.mxu0 %vm4748_vm0, %v4746_v4 }
 0xd91   :  { %v4387_v12 = vpop.trf.xlu0 }
 0xd92   :  { %v1609_v13 = vpop.f32.mrb[36].mxu1  ;;  %v4388_v15 = vunpack.i.l.bf16 %v4387_v12  ;;  %v4391_v25 = vunpack.i.h.bf16 %v4387_v12 }
 0xd93   :  { %v4165_v14 = vpop.f32.mrb[37].mxu1 }
 0xd94   :  { %v1612_v20 = vpop.f32.mrb[38].mxu1 }
 0xd95   :  { %v4166_v21 = vpop.f32.mrb[39].mxu1  ;;  %v4392_v22 = vpop.trf.xlu0  ;;  %v4484_v20 = vld [vmem:[#allocation4 + $0x20] sm:$0xff]  }
 0xd96   :  { %v4393_v23 = vunpack.i.l.bf16 %v4392_v22  ;;  %v4396_v26 = vunpack.i.h.bf16 %v4392_v22 }
 0xd98   :  { %v1788_v24 = vpack.c.bf16 %v4393_v23, %v4388_v15  ;;  %v1789_v34 = vpack.c.bf16 %v4396_v26, %v4391_v25 }
 0xd9a   :  { %4180 = vmatpush3.bf16.msra.mxu0 %v1788_v24 }
 0xd9b   :  { %4191 = vmatprep.subr.bf16.mxu0 %v4746_v4 }
 0xd9d   :  { %4182 = vmatmul.mubr.msk.bf16.vlgmr.msra.gmra.mrb[44].mxu0 %vm445_vm1, %v1791_v11 }
 0xd9e   :  { %4193 = vmatprep.mubr.msk.bf16.mxu0 %vm4748_vm0, %v4746_v4 }
 0xdeb   :  { %v1657_v27 = vpop.f32.mrb[40].mxu0 }
 0xdec   :  { %v1663_v29 = vpack.c.bf16 %v1657_v27, %v1609_v13  ;;  %v4171_v30 = vpop.f32.mrb[41].mxu0 }
 0xded   :  { %v1660_v32 = vpop.f32.mrb[42].mxu0 }
 0xdee   :  { %v4172_v35 = vpop.f32.mrb[43].mxu0  ;;  %4176 = vmatmul.mubr.msk.bf16.vlgmr.msra.gmra.mrb[40].mxu1 %vm445_vm1, %v1663_v29 }
 0xdef   :  { %4186 = vmatpush3.bf16.msra.mxu1 %v1789_v34  ;;  %4187 = vmatprep.mubr.msk.bf16.mxu1 %vm4748_vm0, %v4746_v4 }
 0xdf0   :  { %4197 = vmatprep.subr.bf16.mxu1 %v4746_v4 }
 0xdf6   :  { %4188 = vmatmul.mubr.msk.bf16.vlgmr.msra.gmra.mrb[44].mxu1 %vm445_vm1, %v1836_v36 }
 0xdf7   :  { %4199 = vmatprep.mubr.msk.bf16.mxu1 %vm4748_vm0, %v4746_v4 }
 0xe70   :  { %v1829_v38 = vpop.f32.mrb[44].mxu0 }
 0xe71   :  { %v4183_v39 = vpop.f32.mrb[45].mxu0  ;;  %v1880_v41 = vsel %vm532_vm3, %v1829_v38, -inf }
 0xe72   :  { %1881 = vmax.xlane.f32.xlu1 %v1880_v41  ;;  %v1832_v42 = vpop.f32.mrb[46].mxu0 }
 0xe73   :  { %v4184_v43 = vpop.f32.mrb[47].mxu0 }
 0xec1   :  { %v1709_v44 = vpop.f32.mrb[40].mxu1 }
 0xec2   :  { %v5079_v45 = vadd.f32 %v1709_v44, %v5037_v37  ;;  %v4177_v46 = vpop.f32.mrb[41].mxu1 }
 0xec3   :  { %v1712_v47 = vpop.f32.mrb[42].mxu1 }
 0xec4   :  { %v5082_v50 = vadd.f32 %v1712_v47, %v5040_v40  ;;  %v4178_v28 = vpop.f32.mrb[43].mxu1 }
 0xec9   :  { %v1874_v51 = vpop.f32.mrb[44].mxu1 }
 0xeca   :  { %v4189_v52 = vpop.f32.mrb[45].mxu1  ;;  %v1883_v31 = vsel %vm532_vm3, %v1874_v51, -inf }
 0xecb   :  { %1884 = vmax.xlane.f32.xlu0 %v1883_v31  ;;  %v1877_v53 = vpop.f32.mrb[46].mxu1 }
 0xecc   :  { %v4190_v54 = vpop.f32.mrb[47].mxu1 }
 0xee1   :  { %2127 = vrot.lane.b32.xlu0 %v4908_v18, %s4752_s1 }
 0xeff   :  { %v1882_v55 = vpop.xlane.xlu1 %1881 }
 0xf00   :  { %v1886_v37 = vsub.f32 %v1829_v38, %v1882_v55 }
 0xf02   :  { %v1888_v56 = vmul.f32 1.442695, %v1886_v37 }
 0xf04   :  { %4604 = vpow2.f32 %v1888_v56 }
 0xf0e   :  { %v4605_v57 = vpop.eup %4604 }
 0xf0f   :  { %v1892_v40 = vsel %vm532_vm3, %v4605_v57, 0.0 }
 0xf10   :  { %1893 = vadd.xlane.f32.xlu1 %v1892_v40 }
 0xf21   :  { %1904 = vrot.lane.b32.xlu1 %v4904_v16, %s4737_s19 }
 0xf58   :  { %v1885_v58 = vpop.xlane.xlu0 %1884 }
 0xf59   :  { %v1887_v59 = vsub.f32 %v1874_v51, %v1885_v58 }
 0xf5b   :  { %v1890_v60 = vmul.f32 1.442695, %v1887_v59 }
 0xf5c   :  { %v2128_v34 = vpop.permute.xlu0 %2127 }
 0xf5d   :  { %4606 = vpow2.f32 %v1890_v60 }
 0xf67   :  { %v4607_v61 = vpop.eup %4606 }
 0xf68   :  { %v1895_v1 = vsel %vm532_vm3, %v4607_v61, 0.0 }
 0xf69   :  { %1896 = vadd.xlane.f32.xlu1 %v1895_v1 }
 0xf7a   :  { %1952 = vrot.lane.b32.xlu1 %v4906_v17, %s4737_s19  ;;  %s4753_s19 = smov 32  }
 0xf7e   :  { %4398 = vrot.lane.b32.xlu1 %v4895_v62, %s4752_s1 }
 0xf82   :  { %2172 = vrot.lane.b32.xlu1 %v4910_v19, %s4752_s1 }
 0xf9d   :  { %v1894_v2 = vpop.xlane.xlu1 %1893 }
 0xf9e   :  { %4608 = vrcp.f32 %v1894_v2 }
 0xfa1   :  { %v1905_v3 = vpop.permute.xlu1 %1904 }
 0xfa2   :  { %v1910_v5 = vsel %vm560_vm2, %v1905_v3, 0 }
 0xfa3   :  { %4192 = vmatpush3.bf16.msra.mxu0 %v1910_v5 }
 0xfa4   :  { %4203 = vmatprep.subr.bf16.mxu0 %v4746_v4 }
 0xfa8   :  { %v4609_v6 = vpop.eup %4608 }
 0xfa9   :  { %v1900_v7 = vmul.f32 %v4609_v6, %v4605_v57 }
 0xfab   :  { %v1902_v8 = vpack.c.bf16 %v1900_v7, %v1900_v7 }
 0xfad   :  { %4194 = vmatmul.mubr.msk.bf16.vlgmr.msra.gmra.mrb[48].mxu0 %vm532_vm3, %v1902_v8 }
 0xfae   :  { %4205 = vmatprep.mubr.msk.bf16.mxu0 %vm4748_vm0, %v4746_v4  ;;  %4204 = vmatpush3.bf16.msra.mxu0 %v4484_v20 }
 0xfaf   :  { %4215 = vmatprep.subr.bf16.mxu0 %v4746_v4 }
 0xff6   :  { %v1897_v9 = vpop.xlane.xlu1 %1896 }
 0xff7   :  { %4610 = vrcp.f32 %v1897_v9 }
 0xffa   :  { %v1953_v10 = vpop.permute.xlu1 %1952 }
 0xffb   :  { %v1958_v11 = vsel %vm560_vm2, %v1953_v10, 0 }
 0xffc   :  { %4198 = vmatpush3.bf16.msra.mxu1 %v1958_v11 }
 0xffd   :  { %4209 = vmatprep.subr.bf16.mxu1 %v4746_v4 }
 0xffe   :  { %v4399_v12 = vpop.permute.xlu1 %4398 }
 0xfff   :  { %4403 = vxpose.xlu1.b32.start.end [1/1] (short) (narrow) %v4399_v12, 16 }
0x1001   :  { %v4611_v13 = vpop.eup %4610 }
0x1002   :  { %v1901_v14 = vmul.f32 %v4611_v13, %v4607_v61  ;;  %v2173_v21 = vpop.permute.xlu1 %2172 }
0x1004   :  { %v1903_v15 = vpack.c.bf16 %v1901_v14, %v1901_v14 }
0x1006   :  { %4200 = vmatmul.mubr.msk.bf16.vlgmr.msra.gmra.mrb[48].mxu1 %vm532_vm3, %v1903_v15 }
0x1007   :  { %4211 = vmatprep.mubr.msk.bf16.mxu1 %vm4748_vm0, %v4746_v4 }
0x107f   :  { %v4404_v22 = vpop.trf.xlu1 }
0x1080   :  { %v1946_v23 = vpop.f32.mrb[48].mxu0  ;;  %v4405_v25 = vunpack.i.l.bf16 %v4404_v22  ;;  %v4408_v35 = vunpack.i.h.bf16 %v4404_v22 }
0x1081   :  { %v4195_v24 = vpop.f32.mrb[49].mxu0 }
0x1082   :  { %v1949_v26 = vpop.f32.mrb[50].mxu0 }
0x1083   :  { %v4409_v27 = vpop.trf.xlu1  ;;  %v4196_v29 = vpop.f32.mrb[51].mxu0  ;;  %v4485_v26 = vld [vmem:[#allocation4 + $0x28] sm:$0xff]  }
0x1084   :  { %v4410_v30 = vunpack.i.l.bf16 %v4409_v27  ;;  %v4413_v36 = vunpack.i.h.bf16 %v4409_v27 }
0x1086   :  { %v2125_v32 = vpack.c.bf16 %v4410_v30, %v4405_v25  ;;  %v2126_v43 = vpack.c.bf16 %v4413_v36, %v4408_v35 }
0x1088   :  { %4210 = vmatpush3.bf16.msra.mxu1 %v2125_v32 }
0x1089   :  { %4221 = vmatprep.subr.bf16.mxu1 %v4746_v4 }
0x108b   :  { %4212 = vmatmul.mubr.msk.bf16.vlgmr.msra.gmra.mrb[52].mxu1 %vm445_vm1, %v2128_v34 }
0x108c   :  { %4223 = vmatprep.mubr.msk.bf16.mxu1 %vm4748_vm0, %v4746_v4 }
0x10d9   :  { %v1994_v38 = vpop.f32.mrb[48].mxu1 }
0x10da   :  { %v2000_v39 = vpack.c.bf16 %v1994_v38, %v1946_v23  ;;  %v4201_v41 = vpop.f32.mrb[49].mxu1 }
0x10db   :  { %v1997_v42 = vpop.f32.mrb[50].mxu1 }
0x10dc   :  { %v4202_v44 = vpop.f32.mrb[51].mxu1  ;;  %4206 = vmatmul.mubr.msk.bf16.vlgmr.msra.gmra.mrb[52].mxu0 %vm445_vm1, %v2000_v39 }
0x10dd   :  { %4216 = vmatpush3.bf16.msra.mxu0 %v2126_v43  ;;  %4217 = vmatprep.mubr.msk.bf16.mxu0 %vm4748_vm0, %v4746_v4 }
0x10de   :  { %4227 = vmatprep.subr.bf16.mxu0 %v4746_v4 }
0x10e4   :  { %4218 = vmatmul.mubr.msk.bf16.vlgmr.msra.gmra.mrb[56].mxu0 %vm445_vm1, %v2173_v21 }
0x10e5   :  { %4229 = vmatprep.mubr.msk.bf16.mxu0 %vm4748_vm0, %v4746_v4 }
0x115e   :  { %v2166_v46 = vpop.f32.mrb[52].mxu1 }
0x115f   :  { %v4213_v47 = vpop.f32.mrb[53].mxu1  ;;  %v2217_v28 = vsel %vm532_vm3, %v2166_v46, -inf }
0x1160   :  { %2218 = vmax.xlane.f32.xlu0 %v2217_v28  ;;  %v2169_v51 = vpop.f32.mrb[54].mxu1 }
0x1161   :  { %v4214_v52 = vpop.f32.mrb[55].mxu1 }
0x11af   :  { %v2046_v31 = vpop.f32.mrb[52].mxu0 }
0x11b0   :  { %v5121_v53 = vadd.f32 %v2046_v31, %v5079_v45  ;;  %v4207_v54 = vpop.f32.mrb[53].mxu0 }
0x11b1   :  { %v2049_v55 = vpop.f32.mrb[54].mxu0 }
0x11b2   :  { %v5124_v37 = vadd.f32 %v2049_v55, %v5082_v50  ;;  %v4208_v56 = vpop.f32.mrb[55].mxu0 }
0x11b7   :  { %v2211_v57 = vpop.f32.mrb[56].mxu0 }
0x11b8   :  { %v4219_v40 = vpop.f32.mrb[57].mxu0  ;;  %v2220_v58 = vsel %vm532_vm3, %v2211_v57, -inf }
0x11b9   :  { %2221 = vmax.xlane.f32.xlu1 %v2220_v58  ;;  %v2214_v59 = vpop.f32.mrb[58].mxu0 }
0x11ba   :  { %v4220_v60 = vpop.f32.mrb[59].mxu0 }
0x11ca   :  { %2509 = vrot.lane.b32.xlu1 %v4910_v19, %s4753_s19 }
0x11ed   :  { %v2219_v61 = vpop.xlane.xlu0 %2218 }
0x11ee   :  { %v2223_v45 = vsub.f32 %v2166_v46, %v2219_v61 }
0x11f0   :  { %v2225_v1 = vmul.f32 1.442695, %v2223_v45 }
0x11f2   :  { %4612 = vpow2.f32 %v2225_v1 }
0x11fc   :  { %v4613_v2 = vpop.eup %4612 }
0x11fd   :  { %v2229_v50 = vsel %vm532_vm3, %v4613_v2, 0.0 }
0x11fe   :  { %2230 = vadd.xlane.f32.xlu0 %v2229_v50 }
0x1214   :  { %2241 = vrot.lane.b32.xlu0 %v4904_v16, %s4752_s1 }
0x1246   :  { %v2222_v3 = vpop.xlane.xlu1 %2221 }
0x1247   :  { %v2224_v5 = vsub.f32 %v2211_v57, %v2222_v3 }
0x1249   :  { %v2227_v6 = vmul.f32 1.442695, %v2224_v5 }
0x124a   :  { %v2510_v31 = vpop.permute.xlu1 %2509 }
0x124b   :  { %4614 = vpow2.f32 %v2227_v6 }
0x1255   :  { %v4615_v7 = vpop.eup %4614 }
0x1256   :  { %v2232_v8 = vsel %vm532_vm3, %v4615_v7, 0.0 }
0x1257   :  { %2233 = vadd.xlane.f32.xlu0 %v2232_v8 }
0x126d   :  { %2289 = vrot.lane.b32.xlu0 %v4906_v17, %s4752_s1 }
0x1271   :  { %4415 = vrot.lane.b32.xlu0 %v4895_v62, %s4753_s19 }
0x1275   :  { %2464 = vrot.lane.b32.xlu0 %v4908_v18, %s4753_s19 }
0x128b   :  { %v2231_v9 = vpop.xlane.xlu0 %2230 }
0x128c   :  { %4616 = vrcp.f32 %v2231_v9 }
0x128f   :  { %v2242_v10 = vpop.permute.xlu0 %2241 }
0x1290   :  { %v2247_v11 = vsel %vm560_vm2, %v2242_v10, 0 }
0x1291   :  { %4222 = vmatpush3.bf16.msra.mxu1 %v2247_v11 }
0x1292   :  { %4233 = vmatprep.subr.bf16.mxu1 %v4746_v4 }
0x1296   :  { %v4617_v12 = vpop.eup %4616 }
0x1297   :  { %v2237_v13 = vmul.f32 %v4617_v12, %v4613_v2 }
0x1299   :  { %v2239_v14 = vpack.c.bf16 %v2237_v13, %v2237_v13 }
0x129b   :  { %4224 = vmatmul.mubr.msk.bf16.vlgmr.msra.gmra.mrb[56].mxu1 %vm532_vm3, %v2239_v14 }
0x129c   :  { %4235 = vmatprep.mubr.msk.bf16.mxu1 %vm4748_vm0, %v4746_v4  ;;  %4234 = vmatpush3.bf16.msra.mxu1 %v4485_v26 }
0x129d   :  { %4245 = vmatprep.subr.bf16.mxu1 %v4746_v4 }
0x12e4   :  { %v2234_v15 = vpop.xlane.xlu0 %2233 }
0x12e5   :  { %4618 = vrcp.f32 %v2234_v15 }
0x12e8   :  { %v2290_v20 = vpop.permute.xlu0 %2289 }
0x12e9   :  { %v2295_v21 = vsel %vm560_vm2, %v2290_v20, 0 }
0x12ea   :  { %4228 = vmatpush3.bf16.msra.mxu0 %v2295_v21 }
0x12eb   :  { %4239 = vmatprep.subr.bf16.mxu0 %v4746_v4 }
0x12ec   :  { %v4416_v22 = vpop.permute.xlu0 %4415 }
0x12ed   :  { %4420 = vxpose.xlu0.b32.start.end [1/1] (short) (narrow) %v4416_v22, 16 }
0x12ef   :  { %v4619_v23 = vpop.eup %4618 }
0x12f0   :  { %v2238_v24 = vmul.f32 %v4619_v23, %v4615_v7  ;;  %v2465_v27 = vpop.permute.xlu0 %2464 }
0x12f2   :  { %v2240_v25 = vpack.c.bf16 %v2238_v24, %v2238_v24 }
0x12f4   :  { %4230 = vmatmul.mubr.msk.bf16.vlgmr.msra.gmra.mrb[60].mxu0 %vm532_vm3, %v2240_v25 }
0x12f5   :  { %4241 = vmatprep.mubr.msk.bf16.mxu0 %vm4748_vm0, %v4746_v4 }
0x136d   :  { %v4421_v29 = vpop.trf.xlu0 }
0x136e   :  { %v2283_v30 = vpop.f32.mrb[56].mxu1  ;;  %v4422_v34 = vunpack.i.l.bf16 %v4421_v29  ;;  %v4425_v42 = vunpack.i.h.bf16 %v4421_v29 }
0x136f   :  { %v4225_v32 = vpop.f32.mrb[57].mxu1 }
0x1370   :  { %v2286_v35 = vpop.f32.mrb[58].mxu1 }
0x1371   :  { %v4226_v36 = vpop.f32.mrb[59].mxu1  ;;  %v4426_v38 = vpop.trf.xlu0 }
0x1372   :  { %v4427_v39 = vunpack.i.l.bf16 %v4426_v38  ;;  %v4430_v43 = vunpack.i.h.bf16 %v4426_v38 }
0x1374   :  { %v2462_v41 = vpack.c.bf16 %v4427_v39, %v4422_v34  ;;  %v2463_v51 = vpack.c.bf16 %v4430_v43, %v4425_v42 }
0x1376   :  { %4240 = vmatpush3.bf16.msra.mxu0 %v2462_v41 }
0x1377   :  { %4251 = vmatprep.subr.bf16.mxu0 %v4746_v4 }
0x1379   :  { %4242 = vmatmul.mubr.msk.bf16.vlgmr.msra.gmra.mrb[64].mxu0 %vm445_vm1, %v2465_v27 }
0x137a   :  { %4253 = vmatprep.mubr.msk.bf16.mxu0 %vm4748_vm0, %v4746_v4 }
0x13c7   :  { %v2331_v44 = vpop.f32.mrb[60].mxu0 }
0x13c8   :  { %v2337_v46 = vpack.c.bf16 %v2331_v44, %v2283_v30  ;;  %v4231_v47 = vpop.f32.mrb[61].mxu0  ;;  %v4486_v30 = vld [vmem:[#allocation4 + $0x30] sm:$0xff]  }
0x13c9   :  { %v2334_v28 = vpop.f32.mrb[62].mxu0 }
0x13ca   :  { %v4232_v52 = vpop.f32.mrb[63].mxu0  ;;  %4236 = vmatmul.mubr.msk.bf16.vlgmr.msra.gmra.mrb[60].mxu1 %vm445_vm1, %v2337_v46 }
0x13cb   :  { %4246 = vmatpush3.bf16.msra.mxu1 %v2463_v51  ;;  %4247 = vmatprep.mubr.msk.bf16.mxu1 %vm4748_vm0, %v4746_v4 }
0x13cc   :  { %4257 = vmatprep.subr.bf16.mxu1 %v4746_v4 }
0x13d2   :  { %4248 = vmatmul.mubr.msk.bf16.vlgmr.msra.gmra.mrb[64].mxu1 %vm445_vm1, %v2510_v31 }
0x13d3   :  { %4259 = vmatprep.mubr.msk.bf16.mxu1 %vm4748_vm0, %v4746_v4 }
0x144c   :  { %v2503_v54 = vpop.f32.mrb[64].mxu0 }
0x144d   :  { %v4243_v55 = vpop.f32.mrb[65].mxu0  ;;  %v2554_v56 = vsel %vm532_vm3, %v2503_v54, -inf }
0x144e   :  { %2555 = vmax.xlane.f32.xlu1 %v2554_v56  ;;  %v2506_v57 = vpop.f32.mrb[66].mxu0 }
0x144f   :  { %v4244_v40 = vpop.f32.mrb[67].mxu0 }
0x149d   :  { %v2383_v58 = vpop.f32.mrb[60].mxu1 }
0x149e   :  { %v5163_v59 = vadd.f32 %v2383_v58, %v5121_v53  ;;  %v4237_v60 = vpop.f32.mrb[61].mxu1 }
0x149f   :  { %v2386_v61 = vpop.f32.mrb[62].mxu1 }
0x14a0   :  { %v5166_v45 = vadd.f32 %v2386_v61, %v5124_v37  ;;  %v4238_v1 = vpop.f32.mrb[63].mxu1 }
0x14a5   :  { %v2548_v2 = vpop.f32.mrb[64].mxu1 }
0x14a6   :  { %v4249_v50 = vpop.f32.mrb[65].mxu1  ;;  %v2557_v3 = vsel %vm532_vm3, %v2548_v2, -inf }
0x14a7   :  { %2558 = vmax.xlane.f32.xlu0 %v2557_v3  ;;  %v2551_v5 = vpop.f32.mrb[66].mxu1 }
0x14a8   :  { %v4250_v6 = vpop.f32.mrb[67].mxu1 }
0x14bd   :  { %2801 = vrot.lane.b32.xlu0 %v4908_v18, %s4744_s24 }
0x14db   :  { %v2556_v7 = vpop.xlane.xlu1 %2555 }
0x14dc   :  { %v2560_v8 = vsub.f32 %v2503_v54, %v2556_v7 }
0x14de   :  { %v2562_v53 = vmul.f32 1.442695, %v2560_v8 }
0x14e0   :  { %4620 = vpow2.f32 %v2562_v53 }
0x14ea   :  { %v4621_v9 = vpop.eup %4620 }
0x14eb   :  { %v2566_v10 = vsel %vm532_vm3, %v4621_v9, 0.0 }
0x14ec   :  { %2567 = vadd.xlane.f32.xlu1 %v2566_v10 }
0x14fd   :  { %2578 = vrot.lane.b32.xlu1 %v4904_v16, %s4753_s19 }
0x1534   :  { %v2559_v37 = vpop.xlane.xlu0 %2558 }
0x1535   :  { %v2561_v11 = vsub.f32 %v2548_v2, %v2559_v37 }
0x1537   :  { %v2564_v12 = vmul.f32 1.442695, %v2561_v11 }
0x1538   :  { %v2802_v46 = vpop.permute.xlu0 %2801 }
0x1539   :  { %4622 = vpow2.f32 %v2564_v12 }
0x1543   :  { %v4623_v13 = vpop.eup %4622 }
0x1544   :  { %v2569_v14 = vsel %vm532_vm3, %v4623_v13, 0.0 }
0x1545   :  { %2570 = vadd.xlane.f32.xlu1 %v2569_v14 }
0x1556   :  { %2626 = vrot.lane.b32.xlu1 %v4906_v17, %s4753_s19 }
0x155a   :  { %4432 = vrot.lane.b32.xlu1 %v4895_v62, %s4744_s24 }
0x155e   :  { %2846 = vrot.lane.b32.xlu1 %v4910_v19, %s4744_s24 }
0x1579   :  { %v2568_v18 = vpop.xlane.xlu1 %2567 }
0x157a   :  { %4624 = vrcp.f32 %v2568_v18 }
0x157d   :  { %v2579_v15 = vpop.permute.xlu1 %2578 }
0x157e   :  { %v2584_v20 = vsel %vm560_vm2, %v2579_v15, 0 }
0x157f   :  { %4252 = vmatpush3.bf16.msra.mxu0 %v2584_v20 }
0x1580   :  { %4263 = vmatprep.subr.bf16.mxu0 %v4746_v4 }
0x1584   :  { %v4625_v21 = vpop.eup %4624 }
0x1585   :  { %v2574_v22 = vmul.f32 %v4625_v21, %v4621_v9 }
0x1587   :  { %v2576_v23 = vpack.c.bf16 %v2574_v22, %v2574_v22 }
0x1589   :  { %4254 = vmatmul.mubr.msk.bf16.vlgmr.msra.gmra.mrb[68].mxu0 %vm532_vm3, %v2576_v23 }
0x158a   :  { %4265 = vmatprep.mubr.msk.bf16.mxu0 %vm4748_vm0, %v4746_v4  ;;  %4264 = vmatpush3.bf16.msra.mxu0 %v4486_v30  ;;  %v4487_v30 = vld [vmem:[#allocation4 + $0x38] sm:$0xff]  }
0x158b   :  { %4275 = vmatprep.subr.bf16.mxu0 %v4746_v4 }
0x15d2   :  { %v2571_v62 = vpop.xlane.xlu1 %2570 }
0x15d3   :  { %4626 = vrcp.f32 %v2571_v62 }
0x15d6   :  { %v2627_v24 = vpop.permute.xlu1 %2626 }
0x15d7   :  { %v2632_v19 = vsel %vm560_vm2, %v2627_v24, 0 }
0x15d8   :  { %4258 = vmatpush3.bf16.msra.mxu1 %v2632_v19 }
0x15d9   :  { %4269 = vmatprep.subr.bf16.mxu1 %v4746_v4 }
0x15da   :  { %v4433_v25 = vpop.permute.xlu1 %4432 }
0x15db   :  { %4437 = vxpose.xlu1.b32.start.end [1/1] (short) (narrow) %v4433_v25, 16 }
0x15dd   :  { %v4627_v26 = vpop.eup %4626 }
0x15de   :  { %v2575_v27 = vmul.f32 %v4627_v26, %v4623_v13  ;;  %v2847_v32 = vpop.permute.xlu1 %2846 }
0x15e0   :  { %v2577_v29 = vpack.c.bf16 %v2575_v27, %v2575_v27 }
0x15e2   :  { %4260 = vmatmul.mubr.msk.bf16.vlgmr.msra.gmra.mrb[68].mxu1 %vm532_vm3, %v2577_v29 }
0x15e3   :  { %4271 = vmatprep.mubr.msk.bf16.mxu1 %vm4748_vm0, %v4746_v4 }
0x165b   :  { %v4438_v34 = vpop.trf.xlu1 }
0x165c   :  { %v2620_v35 = vpop.f32.mrb[68].mxu0  ;;  %v4439_v38 = vunpack.i.l.bf16 %v4438_v34  ;;  %v4442_v47 = vunpack.i.h.bf16 %v4438_v34 }
0x165d   :  { %v4255_v36 = vpop.f32.mrb[69].mxu0 }
0x165e   :  { %v2623_v39 = vpop.f32.mrb[70].mxu0 }
0x165f   :  { %v4443_v41 = vpop.trf.xlu1  ;;  %v4256_v42 = vpop.f32.mrb[71].mxu0 }
0x1660   :  { %v4444_v43 = vunpack.i.l.bf16 %v4443_v41  ;;  %v4447_v28 = vunpack.i.h.bf16 %v4443_v41 }
0x1662   :  { %v2799_v44 = vpack.c.bf16 %v4444_v43, %v4439_v38  ;;  %v2800_v55 = vpack.c.bf16 %v4447_v28, %v4442_v47 }
0x1664   :  { %4270 = vmatpush3.bf16.msra.mxu1 %v2799_v44  ;;  %v3840_v44 = vld [vmem:[%s5271_s4] ss:$0 sm:$0xff] }
0x1665   :  { %4281 = vmatprep.subr.bf16.mxu1 %v4746_v4 }
0x1667   :  { %4272 = vmatmul.mubr.msk.bf16.vlgmr.msra.gmra.mrb[72].mxu1 %vm445_vm1, %v2802_v46 }
0x1668   :  { %4283 = vmatprep.mubr.msk.bf16.mxu1 %vm4748_vm0, %v4746_v4 }
0x16b5   :  { %v2668_v51 = vpop.f32.mrb[68].mxu1 }
0x16b6   :  { %v2674_v52 = vpack.c.bf16 %v2668_v51, %v2620_v35  ;;  %v4261_v31 = vpop.f32.mrb[69].mxu1 }
0x16b7   :  { %v2671_v54 = vpop.f32.mrb[70].mxu1 }
0x16b8   :  { %v4262_v56 = vpop.f32.mrb[71].mxu1  ;;  %4266 = vmatmul.mubr.msk.bf16.vlgmr.msra.gmra.mrb[72].mxu0 %vm445_vm1, %v2674_v52 }
0x16b9   :  { %4276 = vmatpush3.bf16.msra.mxu0 %v2800_v55  ;;  %4277 = vmatprep.mubr.msk.bf16.mxu0 %vm4748_vm0, %v4746_v4  ;;  %v4640_v55 = vld [vmem:[%s5267_s0] sm:$0xff] }
0x16ba   :  { %4287 = vmatprep.subr.bf16.mxu0 %v4746_v4 }
0x16c0   :  { %4278 = vmatmul.mubr.msk.bf16.vlgmr.msra.gmra.mrb[76].mxu0 %vm445_vm1, %v2847_v32 }
0x16c1   :  { %4289 = vmatprep.mubr.msk.bf16.mxu0 %vm4748_vm0, %v4746_v4 }
0x173a   :  { %v2840_v57 = vpop.f32.mrb[72].mxu1 }
0x173b   :  { %v4273_v40 = vpop.f32.mrb[73].mxu1  ;;  %v2891_v58 = vsel %vm532_vm3, %v2840_v57, -inf }
0x173c   :  { %2892 = vmax.xlane.f32.xlu0 %v2891_v58  ;;  %v2843_v60 = vpop.f32.mrb[74].mxu1  ;;  %v4488_v40 = vld [vmem:[#allocation6] ss:$16 sps:$4 sm:$0xff]   ;;  %v4490_v58 = vld [vmem:[#allocation6 + $0x4] ss:$16 sps:$4 sm:$0xff]  }
0x173d   :  { %v4274_v61 = vpop.f32.mrb[75].mxu1  ;;  %v4491_v60 = vld [vmem:[#allocation6 + $0x8] ss:$16 sps:$4 sm:$0xff]  }
0x173e   :  { %v4493_v61 = vld [vmem:[#allocation6 + $0xc] ss:$16 sps:$4 sm:$0xff]  }
0x178b   :  { %v2720_v1 = vpop.f32.mrb[72].mxu0 }
0x178c   :  { %v5205_v2 = vadd.f32 %v2720_v1, %v5163_v59  ;;  %v4267_v50 = vpop.f32.mrb[73].mxu0  ;;  %v4496_v1 = vld [vmem:[#allocation6 + $0x24] ss:$16 sps:$4 sm:$0xff]  }
0x178d   :  { %v2723_v3 = vpop.f32.mrb[74].mxu0  ;;  %v4494_v50 = vld [vmem:[#allocation6 + $0x20] ss:$16 sps:$4 sm:$0xff]  }
0x178e   :  { %v5208_v5 = vadd.f32 %v2723_v3, %v5166_v45  ;;  %v4268_v6 = vpop.f32.mrb[75].mxu0  ;;  %v4497_v3 = vld [vmem:[#allocation6 + $0x28] ss:$16 sps:$4 sm:$0xff]  }
0x178f   :  { %v4505_v6 = vld [vmem:[#allocation6 + $0x4c] ss:$16 sps:$4 sm:$0xff]  }
0x1793   :  { %v2885_v7 = vpop.f32.mrb[76].mxu0 }
0x1794   :  { %v4279_v8 = vpop.f32.mrb[77].mxu0  ;;  %v2894_v53 = vsel %vm532_vm3, %v2885_v7, -inf }
0x1795   :  { %2895 = vmax.xlane.f32.xlu1 %v2894_v53  ;;  %v2888_v9 = vpop.f32.mrb[78].mxu0  ;;  %v4503_v8 = vld [vmem:[#allocation6 + $0x48] ss:$16 sps:$4 sm:$0xff]  }
0x1796   :  { %v4280_v10 = vpop.f32.mrb[79].mxu0 }
0x17c9   :  { %v2893_v37 = vpop.xlane.xlu0 %2892 }
0x17ca   :  { %v2897_v11 = vsub.f32 %v2840_v57, %v2893_v37 }
0x17cc   :  { %v2899_v12 = vmul.f32 1.442695, %v2897_v11 }
0x17ce   :  { %4628 = vpow2.f32 %v2899_v12 }
0x17d8   :  { %v4629_v13 = vpop.eup %4628 }
0x17d9   :  { %v2903_v59 = vsel %vm532_vm3, %v4629_v13, 0.0 }
0x17da   :  { %2904 = vadd.xlane.f32.xlu0 %v2903_v59 }
0x17f0   :  { %2915 = vrot.lane.b32.xlu0 %v4904_v16, %s4744_s24 }
0x1822   :  { %v2896_v45 = vpop.xlane.xlu1 %2895 }
0x1823   :  { %v2898_v14 = vsub.f32 %v2885_v7, %v2896_v45  ;;  %v4500_v7 = vld [vmem:[#allocation6 + $0x40] ss:$16 sps:$4 sm:$0xff]   ;;  %v4508_v45 = vld [vmem:[#allocation6 + $0x64] ss:$16 sps:$4 sm:$0xff]  }
0x1825   :  { %v2901_v18 = vmul.f32 1.442695, %v2898_v14  ;;  %v4511_v14 = vld [vmem:[#allocation6 + $0x6c] ss:$16 sps:$4 sm:$0xff]  }
0x1827   :  { %4630 = vpow2.f32 %v2901_v18  ;;  %v4506_v18 = vld [vmem:[#allocation6 + $0x60] ss:$16 sps:$4 sm:$0xff]  }
0x1831   :  { %v4631_v15 = vpop.eup %4630 }
0x1832   :  { %v2906_v20 = vsel %vm532_vm3, %v4631_v15, 0.0 }
0x1833   :  { %2907 = vadd.xlane.f32.xlu0 %v2906_v20  ;;  %v4514_v20 = vld [vmem:[#allocation6 + $0x84] ss:$16 sps:$4 sm:$0xff]  }
0x1849   :  { %2963 = vrot.lane.b32.xlu0 %v4906_v17, %s4744_s24 }
0x1867   :  { %v2905_v21 = vpop.xlane.xlu0 %2904 }
0x1868   :  { %4632 = vrcp.f32 %v2905_v21  ;;  %v4517_v21 = vld [vmem:[#allocation6 + $0x8c] ss:$16 sps:$4 sm:$0xff]  }
0x186b   :  { %v2916_v22 = vpop.permute.xlu0 %2915 }
0x186c   :  { %v2921_v23 = vsel %vm560_vm2, %v2916_v22, 0  ;;  %v4512_v22 = vld [vmem:[#allocation6 + $0x80] ss:$16 sps:$4 sm:$0xff]  }
0x186d   :  { %4282 = vmatpush3.bf16.msra.mxu1 %v2921_v23  ;;  %v4515_v23 = vld [vmem:[#allocation6 + $0x88] ss:$16 sps:$4 sm:$0xff]  }
0x186e   :  { %4293 = vmatprep.subr.bf16.mxu1 %v4746_v4 }
0x1872   :  { %v4633_v16 = vpop.eup %4632 }
0x1873   :  { %v2911_v62 = vmul.f32 %v4633_v16, %v4629_v13  ;;  %v4520_v16 = vld [vmem:[#allocation6 + $0xa4] ss:$16 sps:$4 sm:$0xff]  }
0x1875   :  { %v2913_v24 = vpack.c.bf16 %v2911_v62, %v2911_v62  ;;  %v4523_v62 = vld [vmem:[#allocation6 + $0xac] ss:$16 sps:$4 sm:$0xff]  }
0x1877   :  { %4284 = vmatmul.mubr.msk.bf16.vlgmr.msra.gmra.mrb[76].mxu1 %vm532_vm3, %v2913_v24  ;;  %v4518_v24 = vld [vmem:[#allocation6 + $0xa0] ss:$16 sps:$4 sm:$0xff]  }
0x1878   :  { %4295 = vmatprep.mubr.msk.bf16.mxu1 %vm4748_vm0, %v4746_v4  ;;  %4294 = vmatpush3.bf16.msra.mxu1 %v4487_v30  ;;  %v4535_v30 = vld [vmem:[#allocation6 + $0xec] ss:$16 sps:$4 sm:$0xff]  }
0x1879   :  { %3357 = vmatprep.subr.bf16.mxu1 %v4493_v61  ;;  %v4546_v61 = vld [vmem:[#allocation7 + $0x10] sm:$0xff]  }
0x18c0   :  { %v2908_v19 = vpop.xlane.xlu0 %2907 }
0x18c1   :  { %4634 = vrcp.f32 %v2908_v19  ;;  %v4521_v19 = vld [vmem:[#allocation6 + $0xa8] ss:$16 sps:$4 sm:$0xff]  }
0x18c4   :  { %v2964_v25 = vpop.permute.xlu0 %2963 }
0x18c5   :  { %v2969_v17 = vsel %vm560_vm2, %v2964_v25, 0  ;;  %v4526_v25 = vld [vmem:[#allocation6 + $0xc4] ss:$16 sps:$4 sm:$0xff]  }
0x18c6   :  { %4288 = vmatpush3.bf16.msra.mxu0 %v2969_v17  ;;  %v4529_v17 = vld [vmem:[#allocation6 + $0xcc] ss:$16 sps:$4 sm:$0xff]  }
0x18c7   :  { %3314 = vmatprep.subr.bf16.mxu0 %v4490_v58  ;;  %v4544_v58 = vld [vmem:[#allocation7 + $0x50] sm:$0xff]  }
0x18cb   :  { %v4635_v26 = vpop.eup %4634 }
0x18cc   :  { %v2912_v27 = vmul.f32 %v4635_v26, %v4631_v15  ;;  %v4509_v15 = vld [vmem:[#allocation6 + $0x68] ss:$16 sps:$4 sm:$0xff]   ;;  %v4524_v26 = vld [vmem:[#allocation6 + $0xc0] ss:$16 sps:$4 sm:$0xff]  }
0x18ce   :  { %v2914_v29 = vpack.c.bf16 %v2912_v27, %v2912_v27  ;;  %v4527_v27 = vld [vmem:[#allocation6 + $0xc8] ss:$16 sps:$4 sm:$0xff]  }
0x18d0   :  { %4290 = vmatmul.mubr.msk.bf16.vlgmr.msra.gmra.mrb[80].mxu0 %vm532_vm3, %v2914_v29  ;;  %v4532_v29 = vld [vmem:[#allocation6 + $0xe4] ss:$16 sps:$4 sm:$0xff]  }
0x18d1   :  { %3346 = vmatprep.mubr.bf16.mxu0 %v4747_v33  ;;  %3315 = vmatpush1.bf16.msra.mxu0 %v4488_v40  ;;  %v4543_v40 = vld [vmem:[#allocation7 + $0x88] sm:$0xff]  }
0x18d2   :  { %3316 = vmatprep.subr.bf16.mxu0 %v4496_v1  ;;  %v4547_v1 = vld [vmem:[#allocation7 + $0x90] sm:$0xff]  }
0x18d5   :  { %3317 = vmatpush1.bf16.msra.mxu0 %v4494_v50  ;;  %v4549_v50 = vld [vmem:[#allocation7 + $0xd8] sm:$0xff]  }
0x194a   :  { %v2957_v32 = vpop.f32.mrb[76].mxu1 }
0x194b   :  { %v4285_v34 = vpop.f32.mrb[77].mxu1 }
0x194c   :  { %v2960_v35 = vpop.f32.mrb[78].mxu1  ;;  %v4533_v34 = vld [vmem:[#allocation6 + $0xe8] ss:$16 sps:$4 sm:$0xff]  }
0x194d   :  { %v4286_v36 = vpop.f32.mrb[79].mxu1  ;;  %v4536_v35 = vld [vmem:[#allocation7 + $0x40] sm:$0xff]  }
0x194e   :  { %v4537_v36 = vld [vmem:[#allocation7 + $0xc0] sm:$0xff]  }
0x19a3   :  { %v3005_v4 = vpop.f32.mrb[80].mxu0 }
0x19a4   :  { %v3011_v38 = vpack.c.bf16 %v3005_v4, %v2957_v32  ;;  %v4291_v39 = vpop.f32.mrb[81].mxu0  ;;  %v4530_v32 = vld [vmem:[#allocation6 + $0xe0] ss:$16 sps:$4 sm:$0xff]  }
0x19a5   :  { %v3008_v41 = vpop.f32.mrb[82].mxu0 }
0x19a6   :  { %v4292_v42 = vpop.f32.mrb[83].mxu0  ;;  %4296 = vmatmul.mubr.msk.bf16.vlgmr.msra.gmra.mrb[80].mxu1 %vm445_vm1, %v3011_v38 }
0x19a7   :  { %3389 = vmatprep.mubr.bf16.mxu1 %v4747_v33  ;;  %v4641_v33 = vld [vmem:[%s5267_s0 + $0x8] sm:$0xff]  ;;  %3358 = vmatpush1.bf16.msra.mxu1 %v4491_v60  ;;  %v4545_v60 = vld [vmem:[#allocation7 + $0xd0] sm:$0xff]  }
0x1a79   :  { %v3057_v43 = vpop.f32.mrb[80].mxu1 }
0x1a7a   :  { %v3064_v46 = vadd.f32 %v3057_v43, %v5205_v2  ;;  %v4297_v47 = vpop.f32.mrb[81].mxu1  ;;  %v4499_v2 = vld [vmem:[#allocation6 + $0x2c] ss:$16 sps:$4 sm:$0xff]  }
0x1a7b   :  { %v3060_v28 = vpop.f32.mrb[82].mxu1  ;;  %3359 = vmatprep.subr.bf16.mxu1 %v4499_v2  ;;  %v4548_v2 = vld [vmem:[#allocation7 + $0x58] sm:$0xff]  }
0x1a7c   :  { %v3073_v51 = vadd.f32 %v3840_v44, %v3064_v46  ;;  %v3065_v52 = vadd.f32 %v3060_v28, %v5208_v5  ;;  %v4298_v31 = vpop.f32.mrb[83].mxu1  ;;  %v4502_v5 = vld [vmem:[#allocation6 + $0x44] ss:$16 sps:$4 sm:$0xff]   ;;  %3360 = vmatpush1.bf16.msra.mxu1 %v4497_v3  ;;  %v4550_v3 = vld [vmem:[#allocation7 + $0x18] sm:$0xff]  }
0x1a7d   :  { %3318 = vmatprep.subr.bf16.mxu0 %v4502_v5  ;;  %3361 = vmatprep.subr.bf16.mxu1 %v4505_v6  ;;  %v4551_v5 = vld [vmem:[#allocation7 + $0x98] sm:$0xff]   ;;  %v4552_v6 = vld [vmem:[#allocation7 + $0x60] sm:$0xff]  }
0x1a7e   :  { %v3074_v54 = vadd.f32 %v3840_v44, %v3065_v52  ;;  %v5235_v56 = vadd.f32 %v4640_v55, %v3073_v51  ;;  %3319 = vmatpush1.bf16.msra.mxu0 %v4500_v7  ;;  %v4538_v51 = vld [vmem:[#allocation7] sm:$0xff]   ;;  %v4541_v55 = vld [vmem:[#allocation7 + $0xc8] sm:$0xff]  }
0x1a7f   :  { %3320 = vmatprep.subr.bf16.mxu0 %v4508_v45  ;;  %v4539_v52 = vld [vmem:[#allocation7 + $0x80] sm:$0xff]   ;;  %v4563_v45 = vld [vmem:[#allocation7 + $0xb0] sm:$0xff]  }
0x1a80   :  { %3077 = vadd.xlane.f32.xlu0 %v5235_v56  ;;  %v5241_v57 = vadd.f32 %v4641_v33, %v3074_v54  ;;  %3362 = vmatpush1.bf16.msra.mxu1 %v4503_v8  ;;  %v4540_v54 = vld [vmem:[#allocation7 + $0x48] sm:$0xff]   ;;  %v4553_v7 = vld [vmem:[#allocation7 + $0xe0] sm:$0xff]  }
0x1a81   :  { %3363 = vmatprep.subr.bf16.mxu1 %v4511_v14  ;;  %v4542_v33 = vld [vmem:[#allocation7 + $0x8] sm:$0xff]   ;;  %v4554_v8 = vld [vmem:[#allocation7 + $0x20] sm:$0xff]   ;;  %v4564_v14 = vld [vmem:[#allocation7 + $0x78] sm:$0xff]  }
0x1a82   :  { %3079 = vadd.xlane.f32.xlu1 %v5241_v57  ;;  %3321 = vmatpush1.bf16.msra.mxu0 %v4506_v18  ;;  %v4565_v18 = vld [vmem:[#allocation7 + $0xf8] sm:$0xff]  }
0x1a83   :  { %3322 = vmatprep.subr.bf16.mxu0 %v4514_v20  ;;  %v4567_v20 = vld [vmem:[#allocation7 + $0xb8] sm:$0xff]  }
0x1a84   :  { %3364 = vmatpush1.bf16.msra.mxu1 %v4509_v15  ;;  %v4566_v15 = vld [vmem:[#allocation7 + $0x38] sm:$0xff]  }
0x1a85   :  { %3365 = vmatprep.subr.bf16.mxu1 %v4517_v21  ;;  %v3132_v21 = vld [vmem:[%s5273_s6] sm:$0xf] }
0x1a86   :  { %3323 = vmatpush1.bf16.msra.mxu0 %v4512_v22  ;;  %v3148_v22 = vsub.s32 3, %v4887_v48 }
0x1a87   :  { %3324 = vmatprep.subr.bf16.mxu0 %v4520_v16  ;;  %v3145_v16 = vrot.slane %v3132_v21, %v158_v63 }
0x1a88   :  { %3366 = vmatpush1.bf16.msra.mxu1 %v4515_v23  ;;  %v3137_v23 = vrot.slane %v3132_v21, %v150_v0 }
0x1a89   :  { %3367 = vmatprep.subr.bf16.mxu1 %v4523_v62  ;;  %v3141_v62 = vrot.slane %v3132_v21, %v154_v49 }
0x1a8a   :  { %3325 = vmatpush1.bf16.msra.mxu0 %v4518_v24  ;;  %v3149_v24 = vrot.slane %v3132_v21, %v3148_v22 }
0x1a8b   :  { %3326 = vmatprep.subr.bf16.mxu0 %v4526_v25 }
0x1a8c   :  { %3368 = vmatpush1.bf16.msra.mxu1 %v4521_v19 }
0x1a8d   :  { %3369 = vmatprep.subr.bf16.mxu1 %v4529_v17 }
0x1a8e   :  { %3327 = vmatpush1.bf16.msra.mxu0 %v4524_v26 }
0x1a8f   :  { %3328 = vmatprep.subr.bf16.mxu0 %v4532_v29 }
0x1a90   :  { %3370 = vmatpush1.bf16.msra.mxu1 %v4527_v27 }
0x1a91   :  { %3371 = vmatprep.subr.bf16.mxu1 %v4535_v30 }
0x1a92   :  { %3329 = vmatpush1.bf16.msra.mxu0 %v4530_v32 }
0x1a93   :  { %3995 = vmatprep.subr.bf16.mxu0 %v4536_v35 }
0x1a94   :  { %3372 = vmatpush1.bf16.msra.mxu1 %v4533_v34 }
0x1a95   :  { %4017 = vmatprep.subr.bf16.mxu1 %v4537_v36 }
0x1b0d   :  { %v3078_v53 = vpop.xlane.xlu0 %3077 }
0x1b0e   :  { %v3081_v9 = vmul.f32 0.0078125, %v3078_v53  ;;  %v4555_v53 = vld [vmem:[#allocation7 + $0xa0] sm:$0xff]  }
0x1b0f   :  { %v3080_v10 = vpop.xlane.xlu1 %3079 }
0x1b10   :  { %v3083_v37 = vsub.f32 %v5235_v56, %v3081_v9  ;;  %v3082_v11 = vmul.f32 0.0078125, %v3080_v10  ;;  %v4556_v9 = vld [vmem:[#allocation7 + $0x68] sm:$0xff]  }
0x1b11   :  { %v4557_v10 = vld [vmem:[#allocation7 + $0xe8] sm:$0xff]  }
0x1b12   :  { %v3084_v12 = vsub.f32 %v5241_v57, %v3082_v11  ;;  %v3085_v13 = vmul.f32 %v3083_v37, %v3083_v37  ;;  %v4559_v11 = vld [vmem:[#allocation7 + $0xa8] sm:$0xff]  }
0x1b14   :  { %3087 = vadd.xlane.f32.xlu1 %v3085_v13  ;;  %v3086_v59 = vmul.f32 %v3084_v12, %v3084_v12  ;;  %v4561_v13 = vld [vmem:[#allocation7 + $0xf0] sm:$0xff]  }
0x1b18   :  { %3089 = vadd.xlane.f32.xlu1 %v3086_v59  ;;  %v4562_v59 = vld [vmem:[#allocation7 + $0x30] sm:$0xff]  }
0x1ba1   :  { %v3088_v4 = vpop.xlane.xlu1 %3087 }
0x1ba2   :  { %v3091_v38 = vmul.f32 0.0078125, %v3088_v4 }
0x1ba4   :  { %v3093_v39 = vadd.f32 1e-05, %v3091_v38 }
0x1ba5   :  { %v3090_v41 = vpop.xlane.xlu1 %3089 }
0x1ba6   :  { %v3092_v42 = vmul.f32 0.0078125, %v3090_v41  ;;  %4636 = vrsqrt.f32 %v3093_v39 }
0x1ba8   :  { %v3094_v43 = vadd.f32 1e-05, %v3092_v42 }
0x1baa   :  { %4638 = vrsqrt.f32 %v3094_v43 }
0x1bb0   :  { %v4637_v44 = vpop.eup %4636 }
0x1bb1   :  { %v3097_v47 = vmul.f32 %v4637_v44, %v3083_v37  ;;  %v4558_v37 = vld [vmem:[#allocation7 + $0x28] sm:$0xff]  }
0x1bb4   :  { %v4639_v46 = vpop.eup %4638 }
0x1bb5   :  { %v3098_v28 = vmul.f32 %v4639_v46, %v3084_v12  ;;  %v4560_v12 = vld [vmem:[#allocation7 + $0x70] sm:$0xff]  }
0x1bb7   :  { %v3099_v31 = vpack.c.bf16 %v3098_v28, %v3097_v47 }
0x1bb9   :  { %3347 = vmatmul.mubr.bf16.vlgmr.msra.gmra.mrb[84].mxu0 %v3099_v31  ;;  %3390 = vmatmul.mubr.bf16.vlgmr.msra.gmra.mrb[84].mxu1 %v3099_v31 }
0x1bba   :  { %3996 = vmatpush3.bf16.msra.mxu0 %v4538_v51  ;;  %4018 = vmatpush3.bf16.msra.mxu1 %v4539_v52 }
0x1bbb   :  { %3997 = vmatprep.subr.bf16.mxu0 %v4540_v54  ;;  %4019 = vmatprep.subr.bf16.mxu1 %v4541_v55 }
0x1bbe   :  { %3998 = vmatpush3.bf16.msra.mxu0 %v4542_v33  ;;  %4020 = vmatpush3.bf16.msra.mxu1 %v4543_v40  ;;  %v3873_v33 = vld [vmem:[%s5275_s8] ss:$0 sm:$0xff] }
0x1bbf   :  { %3999 = vmatprep.subr.bf16.mxu0 %v4544_v58  ;;  %4021 = vmatprep.subr.bf16.mxu1 %v4545_v60 }
0x1bc2   :  { %4000 = vmatpush3.bf16.msra.mxu0 %v4546_v61  ;;  %4022 = vmatpush3.bf16.msra.mxu1 %v4547_v1 }
0x1bc3   :  { %4001 = vmatprep.subr.bf16.mxu0 %v4548_v2  ;;  %4023 = vmatprep.subr.bf16.mxu1 %v4549_v50 }
0x1bc6   :  { %4002 = vmatpush3.bf16.msra.mxu0 %v4550_v3  ;;  %4024 = vmatpush3.bf16.msra.mxu1 %v4551_v5 }
0x1bc7   :  { %4003 = vmatprep.subr.bf16.mxu0 %v4552_v6  ;;  %4025 = vmatprep.subr.bf16.mxu1 %v4553_v7 }
0x1bca   :  { %4004 = vmatpush3.bf16.msra.mxu0 %v4554_v8  ;;  %4026 = vmatpush3.bf16.msra.mxu1 %v4555_v53 }
0x1bcb   :  { %4005 = vmatprep.subr.bf16.mxu0 %v4556_v9  ;;  %4027 = vmatprep.subr.bf16.mxu1 %v4557_v10 }
0x1bce   :  { %4006 = vmatpush3.bf16.msra.mxu0 %v4558_v37  ;;  %4028 = vmatpush3.bf16.msra.mxu1 %v4559_v11 }
0x1bcf   :  { %4007 = vmatprep.subr.bf16.mxu0 %v4560_v12  ;;  %4029 = vmatprep.subr.bf16.mxu1 %v4561_v13 }
0x1bd2   :  { %4008 = vmatpush3.bf16.msra.mxu0 %v4562_v59  ;;  %4030 = vmatpush3.bf16.msra.mxu1 %v4563_v45 }
0x1bd3   :  { %4009 = vmatprep.subr.bf16.mxu0 %v4564_v14  ;;  %4031 = vmatprep.subr.bf16.mxu1 %v4565_v18 }
0x1bd6   :  { %4010 = vmatpush3.bf16.msra.mxu0 %v4566_v15  ;;  %4032 = vmatpush3.bf16.msra.mxu1 %v4567_v20 }
0x1c8c   :  { %v3348_v19 = vpop.f32.mrb[84].mxu0  ;;  %v3391_v25 = vpop.f32.mrb[84].mxu1 }
0x1c8d   :  { %v3349_v17 = vadd.f32 %v3348_v19, %v3137_v23  ;;  %v3392_v26 = vadd.f32 %v3391_v25, %v3145_v16  ;;  %v3350_v27 = vpop.f32.mrb[85].mxu0  ;;  %v3393_v29 = vpop.f32.mrb[85].mxu1 }
0x1c8e   :  { %v3351_v30 = vadd.f32 %v3350_v27, %v3141_v62  ;;  %v3394_v32 = vadd.f32 %v3393_v29, %v3149_v24  ;;  %v3352_v34 = vpop.f32.mrb[86].mxu0  ;;  %v3395_v35 = vpop.f32.mrb[86].mxu1 }
0x1c8f   :  { %v3353_v36 = vadd.f32 %v3352_v34, %v3137_v23  ;;  %v3396_v4 = vadd.f32 %v3395_v35, %v3145_v16  ;;  %v3354_v0 = vpop.f32.mrb[87].mxu0  ;;  %v3397_v38 = vpop.f32.mrb[87].mxu1  ;;  %v3400_v41 = vmax.f32 %v3349_v17, 0.0  ;;  %v3402_v48 = vmax.f32 %v3392_v26, 0.0 }
0x1c90   :  { %v3355_v39 = vadd.f32 %v3354_v0, %v3141_v62  ;;  %v3398_v63 = vadd.f32 %v3397_v38, %v3149_v24  ;;  %v3401_v43 = vmax.f32 %v3351_v30, 0.0  ;;  %v3403_v44 = vmax.f32 %v3394_v32, 0.0 }
0x1c91   :  { %v3404_v49 = vmax.f32 %v3353_v36, 0.0  ;;  %v3406_v42 = vmax.f32 %v3396_v4, 0.0 }
0x1c92   :  { %v3405_v46 = vmax.f32 %v3355_v39, 0.0  ;;  %v3407_v47 = vmax.f32 %v3398_v63, 0.0 }
0x1c93   :  { %v3408_v28 = vpack.c.bf16 %v3404_v49, %v3400_v41  ;;  %v3410_v51 = vpack.c.bf16 %v3406_v42, %v3402_v48 }
0x1c94   :  { %v3409_v52 = vpack.c.bf16 %v3405_v46, %v3401_v43  ;;  %v3411_v31 = vpack.c.bf16 %v3407_v47, %v3403_v44 }
0x1c96   :  { %3707 = vmatprep.mubr.bf16.mxu0 %v3409_v52  ;;  %3748 = vmatprep.mubr.bf16.mxu1 %v3411_v31 }
0x1c97   :  { %3708 = vmatmul.mubr.bf16.vlgmr.msra.gmra.mrb[88].mxu0 %v3408_v28  ;;  %3749 = vmatmul.mubr.bf16.vlgmr.msra.gmra.mrb[88].mxu1 %v3410_v51 }
0x1d6a   :  { %v4011_v54 = vpop.f32.mrb[88].mxu0  ;;  %v4033_v55 = vpop.f32.mrb[88].mxu1 }
0x1d6b   :  { %v4012_v40 = vpop.f32.mrb[89].mxu0  ;;  %v4034_v58 = vpop.f32.mrb[89].mxu1 }
0x1d6c   :  { %v4013_v60 = vadd.f32 %v4012_v40, %v4011_v54  ;;  %v4035_v61 = vadd.f32 %v4034_v58, %v4033_v55  ;;  %v4014_v1 = vpop.f32.mrb[90].mxu0  ;;  %v4036_v2 = vpop.f32.mrb[90].mxu1 }
0x1d6d   :  { %v4015_v50 = vpop.f32.mrb[91].mxu0  ;;  %v4037_v3 = vpop.f32.mrb[91].mxu1 }
0x1d6e   :  { %v3710_v5 = vadd.f32 %v4013_v60, %v3873_v33  ;;  %v4016_v6 = vadd.f32 %v4015_v50, %v4014_v1  ;;  %v4038_v7 = vadd.f32 %v4037_v3, %v4036_v2 }
0x1d70   :  { %v3751_v8 = vadd.f32 %v4035_v61, %v3710_v5  ;;  %v3713_v53 = vadd.f32 %v4016_v6, %v3873_v33 }
0x1d72   :  { %v3757_v9 = vadd.f32 %v3751_v8, %v5235_v56  ;;  %v3754_v10 = vadd.f32 %v4038_v7, %v3713_v53 }
0x1d74   :  { %3759 = vst [vmem:[%s5276_s9] sm:$0xff] %v3757_v9  ;;  %v3758_v37 = vadd.f32 %v3754_v10, %v5241_v57 }
0x1d76   :  { %3760 = vst [vmem:[%s5276_s9 + $0x8] sm:$0xff] %v3758_v37 }
0x1d77   :  { %3765 = vsyncpa [#allocation3], 1 }
0x1d78   :  { %3766 = vsyncpa [#allocation5], 1 }
0x1d79   :  { %3767 = vsyncpa [#allocation8], 1 }

</bundles_post_ra>
